<compile_context>
chip_gen: v5e
topology: v5e:2x2
jax: 0.10.0
libtpu: 0.0.40
codegen_flags: <defaults>
</compile_context>

<pallas_src>
import functools
import math

import jax
import jax.numpy as jnp
from jax.experimental import pallas as pl
from jax.experimental.pallas import tpu as pltpu

CFG = dict(
    vocab_size=256,
    context_length=16,
    emb_dim=32,
    n_heads=4,
    n_layers=2,
    drop_rate=0.0,   # dropout is identity (eval / p=0)
    qkv_bias=False,
)
EPS = 1e-5


# ----------------------------- shared math helpers (trace-time, usable in-kernel) ----------

def _layernorm(x, scale, shift):
    # matches the book's LayerNorm: mean / biased variance over last dim, eps=1e-5
    mean = jnp.mean(x, axis=-1, keepdims=True)
    var = jnp.mean((x - mean) ** 2, axis=-1, keepdims=True)   # unbiased=False
    return (x - mean) / jnp.sqrt(var + EPS) * scale + shift


def _gelu(x):
    # tanh-approximation GELU, as in the book's GELU module
    c = math.sqrt(2.0 / math.pi)
    return 0.5 * x * (1.0 + jnp.tanh(c * (x + 0.044715 * x ** 3)))


# ----------------------------- fused GPT kernel ---------------------------------------------

def gpt_kernel(x_ref, mask_ref,
               wqkv_ref, wo_ref, bo_ref,
               ln1s_ref, ln1b_ref, ln2s_ref, ln2b_ref,
               w1_ref, b1_ref, w2_ref, b2_ref,
               fns_ref, fnb_ref, wout_ref,
               o_ref, *, num_heads, n_layers):
    B, S, E = x_ref.shape
    H = num_heads
    hd = E // H
    R = B * S                                       # batch folded into rows

    x = x_ref[...].reshape(R, E)                    # (R, E) f32 residual stream
    mask_add = mask_ref[...]                        # (R, R) block-diag causal, 0 / -1e30

    for l in range(n_layers):                       # static unroll over layers
        # ---------------- attention sub-block (pre-LN + causal MHA + residual) -------------
        shortcut = x
        h = _layernorm(x, ln1s_ref[l], ln1b_ref[l])
        # single fused QKV matmul; 1/sqrt(hd) already folded into the Q columns
        qkv = jnp.dot(h.astype(jnp.bfloat16), wqkv_ref[l],
                      preferred_element_type=jnp.float32)           # (R, 3E)
        q = qkv[:, :E]
        k = qkv[:, E:2 * E]
        v = qkv[:, 2 * E:]

        # per-head score/context matmuls are tiny (K = hd = 8) -> keep them in f32,
        # no sub-tile bf16 pack/unpack
        ctx_heads = []
        for hh in range(H):
            sl = slice(hh * hd, (hh + 1) * hd)
            sc = jnp.einsum('qd,kd->qk', q[:, sl], k[:, sl],
                            preferred_element_type=jnp.float32)     # (R, R)
            sc = sc + mask_add                                      # causal + batch block-diag
            p = jnp.exp(sc - jnp.max(sc, axis=-1, keepdims=True))
            p = p * pl.reciprocal(jnp.sum(p, axis=-1, keepdims=True), approx=True)
            # TODO(synk): attention-weight dropout omitted (drop_rate=0.0 / eval mode)
            ctx_heads.append(jnp.dot(p, v[:, sl],
                                     preferred_element_type=jnp.float32))  # (R, hd)
        ctx = jnp.concatenate(ctx_heads, axis=-1)                   # (R, E)

        x = shortcut + jnp.dot(ctx.astype(jnp.bfloat16), wo_ref[l],
                               preferred_element_type=jnp.float32) + bo_ref[l]

        # ---------------- feed-forward sub-block (pre-LN + MLP + residual) -----------------
        shortcut = x
        h = _layernorm(x, ln2s_ref[l], ln2b_ref[l])
        mid = jnp.dot(h.astype(jnp.bfloat16), w1_ref[l],
                      preferred_element_type=jnp.float32) + b1_ref[l]        # (R, 4E)
        mid = _gelu(mid)
        out = jnp.dot(mid.astype(jnp.bfloat16), w2_ref[l],
                      preferred_element_type=jnp.float32) + b2_ref[l]        # (R, E)
        x = shortcut + out

    # ---------------- final LayerNorm + LM head --------------------------------------------
    h = _layernorm(x, fns_ref[...], fnb_ref[...])
    logits = jnp.dot(h.astype(jnp.bfloat16), wout_ref[...],
                     preferred_element_type=jnp.float32)                     # (R, V)
    o_ref[...] = logits.reshape(B, S, -1)                                    # lane-dense (V=256)


# ----------------------------- pallas_call wrapper ------------------------------------------

def _full_spec(shape):
    # whole-array block (single grid step; weights / activations fully VMEM-resident)
    n = len(shape)
    return pl.BlockSpec(shape, lambda i: (0,) * n)


def prepare_weights(params, cfg):
    """Stack per-layer weights, fuse Q/K/V, fold 1/sqrt(hd) into Wq, cast matmul weights bf16."""
    E, L, H = cfg["emb_dim"], cfg["n_layers"], cfg["n_heads"]
    hd = E // H
    blocks = params["blocks"]

    def st(name):
        return jnp.stack([blk[name] for blk in blocks], axis=0)

    wqkv = jnp.concatenate(
        [st("wq") * (1.0 / math.sqrt(hd)), st("wk"), st("wv")], axis=-1)    # (L, E, 3E)

    return dict(
        wqkv=wqkv.astype(jnp.bfloat16),
        wo=st("wo").astype(jnp.bfloat16), bo=st("bo"),
        ln1s=st("ln1_s"), ln1b=st("ln1_b"),
        ln2s=st("ln2_s"), ln2b=st("ln2_b"),
        w1=st("w1").astype(jnp.bfloat16), b1=st("b1"),
        w2=st("w2").astype(jnp.bfloat16), b2=st("b2"),
        fns=params["fn_s"], fnb=params["fn_b"],
        wout=params["w_out"].astype(jnp.bfloat16),
    )


def build_attn_mask(B, S):
    """Additive mask over the flattened (B*S) rows: causal within a batch row,
    -1e30 between different batch rows (lets the whole batch share one score matmul)."""
    idx = jnp.arange(B * S)
    b = idx // S
    s = idx % S
    ok = (b[:, None] == b[None, :]) & (s[None, :] <= s[:, None])
    return jnp.where(ok, jnp.float32(0.0), jnp.float32(-1e30))


def gpt_forward(in_idx, params, cfg):
    B, S = in_idx.shape
    E, H, L, V = cfg["emb_dim"], cfg["n_heads"], cfg["n_layers"], cfg["vocab_size"]
    H4 = 4 * E

    tok = jnp.take(params["tok_emb"], in_idx, axis=0)            # (B, S, E) embedding gather
    pos = params["pos_emb"][:S][None, :, :]                      # (1, S, E)
    x = tok + pos
    # TODO(synk): drop_emb omitted (drop_rate=0.0 -> identity)

    w = prepare_weights(params, cfg)
    mask = build_attn_mask(B, S)                                 # (B*S, B*S) f32
    kernel = functools.partial(gpt_kernel, num_heads=H, n_layers=L)

    # Single grid step: whole batch processed at once (no per-batch step overhead on
    # single-TC v5e/v6e). At real GPT-2 sizes the MLP/LM-head weights would need
    # single-buffered specs / manual DMA + vocab tiling to fit v7x's 64 MiB VMEM;
    # at this toy size everything is trivially resident.
    return pl.pallas_call(
        kernel,
        out_shape=jax.ShapeDtypeStruct((B, S, V), jnp.float32),
        grid=(1,),
        in_specs=[
            _full_spec((B, S, E)),                               # x
            _full_spec((B * S, B * S)),                          # additive causal mask
            _full_spec((L, E, 3 * E)),                           # fused Wqkv
            _full_spec((L, E, E)), _full_spec((L, 1, E)),        # Wo, bo
            _full_spec((L, 1, E)), _full_spec((L, 1, E)),        # ln1 scale/shift
            _full_spec((L, 1, E)), _full_spec((L, 1, E)),        # ln2 scale/shift
            _full_spec((L, E, H4)), _full_spec((L, 1, H4)),      # W1, b1
            _full_spec((L, H4, E)), _full_spec((L, 1, E)),       # W2, b2
            _full_spec((1, E)), _full_spec((1, E)),              # final norm scale/shift
            _full_spec((E, V)),                                  # LM head
        ],
        out_specs=_full_spec((B, S, V)),
        compiler_params=pltpu.CompilerParams(dimension_semantics=("arbitrary",)),
    )(x, mask, w["wqkv"], w["wo"], w["bo"],
      w["ln1s"], w["ln1b"], w["ln2s"], w["ln2b"],
      w["w1"], w["b1"], w["w2"], w["b2"],
      w["fns"], w["fnb"], w["wout"])


# ----------------------------- model params --------------------------------------------------

def init_params(key, cfg):
    V, C, E = cfg["vocab_size"], cfg["context_length"], cfg["emb_dim"]
    H4 = 4 * E
    keys = iter(jax.random.split(key, 64))

    def nrm(shape):
        return jax.random.normal(next(keys), shape, jnp.float32) * 0.02

    params = {
        "tok_emb": nrm((V, E)),
        "pos_emb": nrm((C, E)),
        "blocks": [],
        "fn_s": jnp.ones((1, E), jnp.float32),
        "fn_b": jnp.zeros((1, E), jnp.float32),
    }
    for _ in range(cfg["n_layers"]):
        params["blocks"].append(dict(
            wq=nrm((E, E)), wk=nrm((E, E)), wv=nrm((E, E)),      # qkv_bias=False
            wo=nrm((E, E)), bo=jnp.zeros((1, E), jnp.float32),
            ln1_s=jnp.ones((1, E), jnp.float32), ln1_b=jnp.zeros((1, E), jnp.float32),
            ln2_s=jnp.ones((1, E), jnp.float32), ln2_b=jnp.zeros((1, E), jnp.float32),
            w1=nrm((E, H4)), b1=jnp.zeros((1, H4), jnp.float32),
            w2=nrm((H4, E)), b2=jnp.zeros((1, E), jnp.float32),
        ))
    params["w_out"] = nrm((E, V))     # out_head, bias=False
    return params


# ----------------------------- pure-JAX reference (for verification) ------------------------

def ref_forward(in_idx, params, cfg):
    B, S = in_idx.shape
    E, H = cfg["emb_dim"], cfg["n_heads"]
    hd = E // H
    x = jnp.take(params["tok_emb"], in_idx, axis=0) + params["pos_emb"][:S][None]
    causal = jnp.tril(jnp.ones((S, S), bool))
    for p in params["blocks"]:
        sc_ = x
        h = _layernorm(x, p["ln1_s"][0], p["ln1_b"][0])
        q = (h @ p["wq"]).reshape(B, S, H, hd).transpose(0, 2, 1, 3)
        k = (h @ p["wk"]).reshape(B, S, H, hd).transpose(0, 2, 1, 3)
        v = (h @ p["wv"]).reshape(B, S, H, hd).transpose(0, 2, 1, 3)
        att = (q @ jnp.swapaxes(k, -1, -2)) / math.sqrt(hd)
        att = jnp.where(causal[None, None], att, -jnp.inf)
        att = jax.nn.softmax(att, axis=-1)
        ctx = (att @ v).transpose(0, 2, 1, 3).reshape(B, S, E)
        x = sc_ + ctx @ p["wo"] + p["bo"][0]
        sc_ = x
        h = _layernorm(x, p["ln2_s"][0], p["ln2_b"][0])
        h = _gelu(h @ p["w1"] + p["b1"][0])
        x = sc_ + h @ p["w2"] + p["b2"][0]
    h = _layernorm(x, params["fn_s"][0], params["fn_b"][0])
    return h @ params["w_out"]


# ----------------------------- main ----------------------------------------------------------

if __name__ == "__main__":
    cfg = CFG
    key = jax.random.PRNGKey(0)
    pkey, dkey = jax.random.split(key)
    params = init_params(pkey, cfg)

    B, S = 2, 8
    in_idx = jax.random.randint(dkey, (B, S), 0, cfg["vocab_size"], dtype=jnp.int32)

    logits = gpt_forward(in_idx, params, cfg)
    logits = jax.block_until_ready(logits)
    assert logits.shape == (B, S, cfg["vocab_size"]), logits.shape

    ref = jax.block_until_ready(ref_forward(in_idx, params, cfg))
    # bf16 matmul operands + approx reciprocal -> slightly relaxed tolerance vs pure-f32
    assert jnp.allclose(logits, ref, atol=2e-2, rtol=2e-2), float(jnp.max(jnp.abs(logits - ref)))

    print("KERNEL_OK")
</pallas_src>

<mosaic_0001>
module attributes {stable_mosaic.version = 11 : i64} {
  func.func @gpt_kernel(%arg0: i32, %arg1: memref<2x8x32xf32, #tpu.memory_space<vmem>>, %arg2: memref<16x16xf32, #tpu.memory_space<vmem>>, %arg3: memref<2x32x96xbf16, #tpu.memory_space<vmem>>, %arg4: memref<2x32x32xbf16, #tpu.memory_space<vmem>>, %arg5: memref<2x1x32xf32, #tpu.memory_space<vmem>>, %arg6: memref<2x1x32xf32, #tpu.memory_space<vmem>>, %arg7: memref<2x1x32xf32, #tpu.memory_space<vmem>>, %arg8: memref<2x1x32xf32, #tpu.memory_space<vmem>>, %arg9: memref<2x1x32xf32, #tpu.memory_space<vmem>>, %arg10: memref<2x32x128xbf16, #tpu.memory_space<vmem>>, %arg11: memref<2x1x128xf32, #tpu.memory_space<vmem>>, %arg12: memref<2x128x32xbf16, #tpu.memory_space<vmem>>, %arg13: memref<2x1x32xf32, #tpu.memory_space<vmem>>, %arg14: memref<1x32xf32, #tpu.memory_space<vmem>>, %arg15: memref<1x32xf32, #tpu.memory_space<vmem>>, %arg16: memref<32x256xbf16, #tpu.memory_space<vmem>>, %arg17: memref<2x8x256xf32, #tpu.memory_space<vmem>>) attributes {dimension_semantics = [#tpu.dimension_semantics<arbitrary>], iteration_bounds = array<i64: 1>, scalar_prefetch = 0 : i64, scratch_operands = 0 : i64, tpu.core_type = #tpu.core_type<tc>, window_params = [{pipeline_mode = #tpu.pipeline_mode<synchronous>, transform_indices = @transform_0, window_bounds = array<i64: 2, 8, 32>}, {pipeline_mode = #tpu.pipeline_mode<synchronous>, transform_indices = @transform_1, window_bounds = array<i64: 16, 16>}, {pipeline_mode = #tpu.pipeline_mode<synchronous>, transform_indices = @transform_2, window_bounds = array<i64: 2, 32, 96>}, {pipeline_mode = #tpu.pipeline_mode<synchronous>, transform_indices = @transform_3, window_bounds = array<i64: 2, 32, 32>}, {pipeline_mode = #tpu.pipeline_mode<synchronous>, transform_indices = @transform_4, window_bounds = array<i64: 2, 1, 32>}, {pipeline_mode = #tpu.pipeline_mode<synchronous>, transform_indices = @transform_5, window_bounds = array<i64: 2, 1, 32>}, {pipeline_mode = #tpu.pipeline_mode<synchronous>, transform_indices = @transform_6, window_bounds = array<i64: 2, 1, 32>}, {pipeline_mode = #tpu.pipeline_mode<synchronous>, transform_indices = @transform_7, window_bounds = array<i64: 2, 1, 32>}, {pipeline_mode = #tpu.pipeline_mode<synchronous>, transform_indices = @transform_8, window_bounds = array<i64: 2, 1, 32>}, {pipeline_mode = #tpu.pipeline_mode<synchronous>, transform_indices = @transform_9, window_bounds = array<i64: 2, 32, 128>}, {pipeline_mode = #tpu.pipeline_mode<synchronous>, transform_indices = @transform_10, window_bounds = array<i64: 2, 1, 128>}, {pipeline_mode = #tpu.pipeline_mode<synchronous>, transform_indices = @transform_11, window_bounds = array<i64: 2, 128, 32>}, {pipeline_mode = #tpu.pipeline_mode<synchronous>, transform_indices = @transform_12, window_bounds = array<i64: 2, 1, 32>}, {pipeline_mode = #tpu.pipeline_mode<synchronous>, transform_indices = @transform_13, window_bounds = array<i64: 1, 32>}, {pipeline_mode = #tpu.pipeline_mode<synchronous>, transform_indices = @transform_14, window_bounds = array<i64: 1, 32>}, {pipeline_mode = #tpu.pipeline_mode<synchronous>, transform_indices = @transform_15, window_bounds = array<i64: 32, 256>}, {pipeline_mode = #tpu.pipeline_mode<synchronous>, transform_indices = @transform_16, window_bounds = array<i64: 2, 8, 256>}]} {
    %c0 = arith.constant 0 : index
    %c0_0 = arith.constant 0 : index
    %c0_1 = arith.constant 0 : index
    %0 = vector.load %arg1[%c0, %c0_0, %c0_1] : memref<2x8x32xf32, #tpu.memory_space<vmem>>, vector<2x8x32xf32>
    %1 = vector.shape_cast %0 : vector<2x8x32xf32> to vector<16x32xf32>
    %c0_2 = arith.constant 0 : index
    %c0_3 = arith.constant 0 : index
    %2 = vector.load %arg2[%c0_2, %c0_3] : memref<16x16xf32, #tpu.memory_space<vmem>>, vector<16x16xf32>
    %c0_4 = arith.constant 0 : index
    %c0_5 = arith.constant 0 : index
    %c0_6 = arith.constant 0 : index
    %3 = vector.load %arg6[%c0_4, %c0_5, %c0_6] : memref<2x1x32xf32, #tpu.memory_space<vmem>>, vector<1x1x32xf32>
    %4 = vector.shape_cast %3 : vector<1x1x32xf32> to vector<1x32xf32>
    %c0_7 = arith.constant 0 : index
    %c0_8 = arith.constant 0 : index
    %c0_9 = arith.constant 0 : index
    %5 = vector.load %arg7[%c0_7, %c0_8, %c0_9] : memref<2x1x32xf32, #tpu.memory_space<vmem>>, vector<1x1x32xf32>
    %6 = vector.shape_cast %5 : vector<1x1x32xf32> to vector<1x32xf32>
    %cst = arith.constant dense<0.000000e+00> : vector<16xf32>
    %7 = vector.multi_reduction <add>, %1, %cst [1] : vector<16x32xf32> to vector<16xf32>
    %8 = vector.shape_cast %7 : vector<16xf32> to vector<16x1xf32>
    %cst_10 = arith.constant 3.200000e+01 : f32
    %9 = vector.broadcast %cst_10 : f32 to vector<16x1xf32>
    %10 = arith.divf %8, %9 : vector<16x1xf32>
    %11 = vector.broadcast %10 : vector<16x1xf32> to vector<16x32xf32>
    %12 = arith.subf %1, %11 : vector<16x32xf32>
    %13 = arith.mulf %12, %12 : vector<16x32xf32>
    %cst_11 = arith.constant dense<0.000000e+00> : vector<16xf32>
    %14 = vector.multi_reduction <add>, %13, %cst_11 [1] : vector<16x32xf32> to vector<16xf32>
    %15 = vector.shape_cast %14 : vector<16xf32> to vector<16x1xf32>
    %cst_12 = arith.constant 3.200000e+01 : f32
    %16 = vector.broadcast %cst_12 : f32 to vector<16x1xf32>
    %17 = arith.divf %15, %16 : vector<16x1xf32>
    %18 = vector.broadcast %10 : vector<16x1xf32> to vector<16x32xf32>
    %19 = arith.subf %1, %18 : vector<16x32xf32>
    %cst_13 = arith.constant 9.99999974E-6 : f32
    %20 = vector.broadcast %cst_13 : f32 to vector<16x1xf32>
    %21 = arith.addf %17, %20 : vector<16x1xf32>
    %22 = math.sqrt %21 : vector<16x1xf32>
    %23 = vector.broadcast %22 : vector<16x1xf32> to vector<16x32xf32>
    %24 = arith.divf %19, %23 : vector<16x32xf32>
    %25 = vector.broadcast %4 : vector<1x32xf32> to vector<16x32xf32>
    %26 = arith.mulf %24, %25 : vector<16x32xf32>
    %27 = vector.broadcast %6 : vector<1x32xf32> to vector<16x32xf32>
    %28 = arith.addf %26, %27 : vector<16x32xf32>
    %29 = arith.truncf %28 : vector<16x32xf32> to vector<16x32xbf16>
    %c0_14 = arith.constant 0 : index
    %c0_15 = arith.constant 0 : index
    %c0_16 = arith.constant 0 : index
    %30 = vector.load %arg3[%c0_14, %c0_15, %c0_16] : memref<2x32x96xbf16, #tpu.memory_space<vmem>>, vector<1x32x96xbf16>
    %31 = vector.shape_cast %30 : vector<1x32x96xbf16> to vector<32x96xbf16>
    %cst_17 = arith.constant dense<0.000000e+00> : vector<16x96xf32>
    %32 = tpu.matmul %29, %31, %cst_17 {dimension_numbers = #tpu.dot_dimension_numbers<[1], [0], [0], [1], [0, 0, 1, 1], [], []>} : vector<16x32xbf16>, vector<32x96xbf16>, vector<16x96xf32> -> vector<16x96xf32>
    %33 = vector.extract_strided_slice %32 {offsets = [0, 0], sizes = [16, 32], strides = [1, 1]} : vector<16x96xf32> to vector<16x32xf32>
    %34 = vector.extract_strided_slice %32 {offsets = [0, 32], sizes = [16, 32], strides = [1, 1]} : vector<16x96xf32> to vector<16x32xf32>
    %35 = vector.extract_strided_slice %32 {offsets = [0, 64], sizes = [16, 32], strides = [1, 1]} : vector<16x96xf32> to vector<16x32xf32>
    %36 = vector.extract_strided_slice %33 {offsets = [0, 0], sizes = [16, 8], strides = [1, 1]} : vector<16x32xf32> to vector<16x8xf32>
    %37 = vector.extract_strided_slice %34 {offsets = [0, 0], sizes = [16, 8], strides = [1, 1]} : vector<16x32xf32> to vector<16x8xf32>
    "tpu.trace_start"() <{level = 10 : i32, message = "qd,kd->qk"}> : () -> ()
    %cst_18 = arith.constant dense<0.000000e+00> : vector<16x16xf32>
    %38 = tpu.matmul %36, %37, %cst_18 {dimension_numbers = #tpu.dot_dimension_numbers<[1], [1], [0], [0], [0, 0, 1, 0], [], []>} : vector<16x8xf32>, vector<16x8xf32>, vector<16x16xf32> -> vector<16x16xf32>
    "tpu.trace_stop"() : () -> ()
    %39 = arith.addf %38, %2 : vector<16x16xf32>
    %cst_19 = arith.constant dense<0xFF800000> : vector<16xf32>
    %40 = vector.multi_reduction <maximumf>, %39, %cst_19 [1] : vector<16x16xf32> to vector<16xf32>
    %41 = vector.shape_cast %40 : vector<16xf32> to vector<16x1xf32>
    %42 = vector.broadcast %41 : vector<16x1xf32> to vector<16x16xf32>
    %43 = arith.subf %39, %42 : vector<16x16xf32>
    %44 = math.exp %43 : vector<16x16xf32>
    %cst_20 = arith.constant dense<0.000000e+00> : vector<16xf32>
    %45 = vector.multi_reduction <add>, %44, %cst_20 [1] : vector<16x16xf32> to vector<16xf32>
    %46 = vector.shape_cast %45 : vector<16xf32> to vector<16x1xf32>
    %47 = tpu.reciprocal %46 {approx = true} : vector<16x1xf32> -> vector<16x1xf32>
    %48 = vector.broadcast %47 : vector<16x1xf32> to vector<16x16xf32>
    %49 = arith.mulf %44, %48 : vector<16x16xf32>
    %50 = vector.extract_strided_slice %35 {offsets = [0, 0], sizes = [16, 8], strides = [1, 1]} : vector<16x32xf32> to vector<16x8xf32>
    %cst_21 = arith.constant dense<0.000000e+00> : vector<16x8xf32>
    %51 = tpu.matmul %49, %50, %cst_21 {dimension_numbers = #tpu.dot_dimension_numbers<[1], [0], [0], [1], [0, 0, 1, 1], [], []>} : vector<16x16xf32>, vector<16x8xf32>, vector<16x8xf32> -> vector<16x8xf32>
    %52 = vector.extract_strided_slice %33 {offsets = [0, 8], sizes = [16, 8], strides = [1, 1]} : vector<16x32xf32> to vector<16x8xf32>
    %53 = vector.extract_strided_slice %34 {offsets = [0, 8], sizes = [16, 8], strides = [1, 1]} : vector<16x32xf32> to vector<16x8xf32>
    "tpu.trace_start"() <{level = 10 : i32, message = "qd,kd->qk"}> : () -> ()
    %cst_22 = arith.constant dense<0.000000e+00> : vector<16x16xf32>
    %54 = tpu.matmul %52, %53, %cst_22 {dimension_numbers = #tpu.dot_dimension_numbers<[1], [1], [0], [0], [0, 0, 1, 0], [], []>} : vector<16x8xf32>, vector<16x8xf32>, vector<16x16xf32> -> vector<16x16xf32>
    "tpu.trace_stop"() : () -> ()
    %55 = arith.addf %54, %2 : vector<16x16xf32>
    %cst_23 = arith.constant dense<0xFF800000> : vector<16xf32>
    %56 = vector.multi_reduction <maximumf>, %55, %cst_23 [1] : vector<16x16xf32> to vector<16xf32>
    %57 = vector.shape_cast %56 : vector<16xf32> to vector<16x1xf32>
    %58 = vector.broadcast %57 : vector<16x1xf32> to vector<16x16xf32>
    %59 = arith.subf %55, %58 : vector<16x16xf32>
    %60 = math.exp %59 : vector<16x16xf32>
    %cst_24 = arith.constant dense<0.000000e+00> : vector<16xf32>
    %61 = vector.multi_reduction <add>, %60, %cst_24 [1] : vector<16x16xf32> to vector<16xf32>
    %62 = vector.shape_cast %61 : vector<16xf32> to vector<16x1xf32>
    %63 = tpu.reciprocal %62 {approx = true} : vector<16x1xf32> -> vector<16x1xf32>
    %64 = vector.broadcast %63 : vector<16x1xf32> to vector<16x16xf32>
    %65 = arith.mulf %60, %64 : vector<16x16xf32>
    %66 = vector.extract_strided_slice %35 {offsets = [0, 8], sizes = [16, 8], strides = [1, 1]} : vector<16x32xf32> to vector<16x8xf32>
    %cst_25 = arith.constant dense<0.000000e+00> : vector<16x8xf32>
    %67 = tpu.matmul %65, %66, %cst_25 {dimension_numbers = #tpu.dot_dimension_numbers<[1], [0], [0], [1], [0, 0, 1, 1], [], []>} : vector<16x16xf32>, vector<16x8xf32>, vector<16x8xf32> -> vector<16x8xf32>
    %68 = vector.extract_strided_slice %33 {offsets = [0, 16], sizes = [16, 8], strides = [1, 1]} : vector<16x32xf32> to vector<16x8xf32>
    %69 = vector.extract_strided_slice %34 {offsets = [0, 16], sizes = [16, 8], strides = [1, 1]} : vector<16x32xf32> to vector<16x8xf32>
    "tpu.trace_start"() <{level = 10 : i32, message = "qd,kd->qk"}> : () -> ()
    %cst_26 = arith.constant dense<0.000000e+00> : vector<16x16xf32>
    %70 = tpu.matmul %68, %69, %cst_26 {dimension_numbers = #tpu.dot_dimension_numbers<[1], [1], [0], [0], [0, 0, 1, 0], [], []>} : vector<16x8xf32>, vector<16x8xf32>, vector<16x16xf32> -> vector<16x16xf32>
    "tpu.trace_stop"() : () -> ()
    %71 = arith.addf %70, %2 : vector<16x16xf32>
    %cst_27 = arith.constant dense<0xFF800000> : vector<16xf32>
    %72 = vector.multi_reduction <maximumf>, %71, %cst_27 [1] : vector<16x16xf32> to vector<16xf32>
    %73 = vector.shape_cast %72 : vector<16xf32> to vector<16x1xf32>
    %74 = vector.broadcast %73 : vector<16x1xf32> to vector<16x16xf32>
    %75 = arith.subf %71, %74 : vector<16x16xf32>
    %76 = math.exp %75 : vector<16x16xf32>
    %cst_28 = arith.constant dense<0.000000e+00> : vector<16xf32>
    %77 = vector.multi_reduction <add>, %76, %cst_28 [1] : vector<16x16xf32> to vector<16xf32>
    %78 = vector.shape_cast %77 : vector<16xf32> to vector<16x1xf32>
    %79 = tpu.reciprocal %78 {approx = true} : vector<16x1xf32> -> vector<16x1xf32>
    %80 = vector.broadcast %79 : vector<16x1xf32> to vector<16x16xf32>
    %81 = arith.mulf %76, %80 : vector<16x16xf32>
    %82 = vector.extract_strided_slice %35 {offsets = [0, 16], sizes = [16, 8], strides = [1, 1]} : vector<16x32xf32> to vector<16x8xf32>
    %cst_29 = arith.constant dense<0.000000e+00> : vector<16x8xf32>
    %83 = tpu.matmul %81, %82, %cst_29 {dimension_numbers = #tpu.dot_dimension_numbers<[1], [0], [0], [1], [0, 0, 1, 1], [], []>} : vector<16x16xf32>, vector<16x8xf32>, vector<16x8xf32> -> vector<16x8xf32>
    %84 = vector.extract_strided_slice %33 {offsets = [0, 24], sizes = [16, 8], strides = [1, 1]} : vector<16x32xf32> to vector<16x8xf32>
    %85 = vector.extract_strided_slice %34 {offsets = [0, 24], sizes = [16, 8], strides = [1, 1]} : vector<16x32xf32> to vector<16x8xf32>
    "tpu.trace_start"() <{level = 10 : i32, message = "qd,kd->qk"}> : () -> ()
    %cst_30 = arith.constant dense<0.000000e+00> : vector<16x16xf32>
    %86 = tpu.matmul %84, %85, %cst_30 {dimension_numbers = #tpu.dot_dimension_numbers<[1], [1], [0], [0], [0, 0, 1, 0], [], []>} : vector<16x8xf32>, vector<16x8xf32>, vector<16x16xf32> -> vector<16x16xf32>
    "tpu.trace_stop"() : () -> ()
    %87 = arith.addf %86, %2 : vector<16x16xf32>
    %cst_31 = arith.constant dense<0xFF800000> : vector<16xf32>
    %88 = vector.multi_reduction <maximumf>, %87, %cst_31 [1] : vector<16x16xf32> to vector<16xf32>
    %89 = vector.shape_cast %88 : vector<16xf32> to vector<16x1xf32>
    %90 = vector.broadcast %89 : vector<16x1xf32> to vector<16x16xf32>
    %91 = arith.subf %87, %90 : vector<16x16xf32>
    %92 = math.exp %91 : vector<16x16xf32>
    %cst_32 = arith.constant dense<0.000000e+00> : vector<16xf32>
    %93 = vector.multi_reduction <add>, %92, %cst_32 [1] : vector<16x16xf32> to vector<16xf32>
    %94 = vector.shape_cast %93 : vector<16xf32> to vector<16x1xf32>
    %95 = tpu.reciprocal %94 {approx = true} : vector<16x1xf32> -> vector<16x1xf32>
    %96 = vector.broadcast %95 : vector<16x1xf32> to vector<16x16xf32>
    %97 = arith.mulf %92, %96 : vector<16x16xf32>
    %98 = vector.extract_strided_slice %35 {offsets = [0, 24], sizes = [16, 8], strides = [1, 1]} : vector<16x32xf32> to vector<16x8xf32>
    %cst_33 = arith.constant dense<0.000000e+00> : vector<16x8xf32>
    %99 = tpu.matmul %97, %98, %cst_33 {dimension_numbers = #tpu.dot_dimension_numbers<[1], [0], [0], [1], [0, 0, 1, 1], [], []>} : vector<16x16xf32>, vector<16x8xf32>, vector<16x8xf32> -> vector<16x8xf32>
    %100 = tpu.concatenate %51, %67, %83, %99 in 1 : vector<16x8xf32>, vector<16x8xf32>, vector<16x8xf32>, vector<16x8xf32> -> vector<16x32xf32>
    %101 = arith.truncf %100 : vector<16x32xf32> to vector<16x32xbf16>
    %c0_34 = arith.constant 0 : index
    %c0_35 = arith.constant 0 : index
    %c0_36 = arith.constant 0 : index
    %102 = vector.load %arg4[%c0_34, %c0_35, %c0_36] : memref<2x32x32xbf16, #tpu.memory_space<vmem>>, vector<1x32x32xbf16>
    %103 = vector.shape_cast %102 : vector<1x32x32xbf16> to vector<32x32xbf16>
    %cst_37 = arith.constant dense<0.000000e+00> : vector<16x32xf32>
    %104 = tpu.matmul %101, %103, %cst_37 {dimension_numbers = #tpu.dot_dimension_numbers<[1], [0], [0], [1], [0, 0, 1, 1], [], []>} : vector<16x32xbf16>, vector<32x32xbf16>, vector<16x32xf32> -> vector<16x32xf32>
    %105 = arith.addf %1, %104 : vector<16x32xf32>
    %c0_38 = arith.constant 0 : index
    %c0_39 = arith.constant 0 : index
    %c0_40 = arith.constant 0 : index
    %106 = vector.load %arg5[%c0_38, %c0_39, %c0_40] : memref<2x1x32xf32, #tpu.memory_space<vmem>>, vector<1x1x32xf32>
    %107 = vector.shape_cast %106 : vector<1x1x32xf32> to vector<1x32xf32>
    %108 = vector.broadcast %107 : vector<1x32xf32> to vector<16x32xf32>
    %109 = arith.addf %105, %108 : vector<16x32xf32>
    %c0_41 = arith.constant 0 : index
    %c0_42 = arith.constant 0 : index
    %c0_43 = arith.constant 0 : index
    %110 = vector.load %arg8[%c0_41, %c0_42, %c0_43] : memref<2x1x32xf32, #tpu.memory_space<vmem>>, vector<1x1x32xf32>
    %111 = vector.shape_cast %110 : vector<1x1x32xf32> to vector<1x32xf32>
    %c0_44 = arith.constant 0 : index
    %c0_45 = arith.constant 0 : index
    %c0_46 = arith.constant 0 : index
    %112 = vector.load %arg9[%c0_44, %c0_45, %c0_46] : memref<2x1x32xf32, #tpu.memory_space<vmem>>, vector<1x1x32xf32>
    %113 = vector.shape_cast %112 : vector<1x1x32xf32> to vector<1x32xf32>
    %cst_47 = arith.constant dense<0.000000e+00> : vector<16xf32>
    %114 = vector.multi_reduction <add>, %109, %cst_47 [1] : vector<16x32xf32> to vector<16xf32>
    %115 = vector.shape_cast %114 : vector<16xf32> to vector<16x1xf32>
    %cst_48 = arith.constant 3.200000e+01 : f32
    %116 = vector.broadcast %cst_48 : f32 to vector<16x1xf32>
    %117 = arith.divf %115, %116 : vector<16x1xf32>
    %118 = vector.broadcast %117 : vector<16x1xf32> to vector<16x32xf32>
    %119 = arith.subf %109, %118 : vector<16x32xf32>
    %120 = arith.mulf %119, %119 : vector<16x32xf32>
    %cst_49 = arith.constant dense<0.000000e+00> : vector<16xf32>
    %121 = vector.multi_reduction <add>, %120, %cst_49 [1] : vector<16x32xf32> to vector<16xf32>
    %122 = vector.shape_cast %121 : vector<16xf32> to vector<16x1xf32>
    %cst_50 = arith.constant 3.200000e+01 : f32
    %123 = vector.broadcast %cst_50 : f32 to vector<16x1xf32>
    %124 = arith.divf %122, %123 : vector<16x1xf32>
    %125 = vector.broadcast %117 : vector<16x1xf32> to vector<16x32xf32>
    %126 = arith.subf %109, %125 : vector<16x32xf32>
    %cst_51 = arith.constant 9.99999974E-6 : f32
    %127 = vector.broadcast %cst_51 : f32 to vector<16x1xf32>
    %128 = arith.addf %124, %127 : vector<16x1xf32>
    %129 = math.sqrt %128 : vector<16x1xf32>
    %130 = vector.broadcast %129 : vector<16x1xf32> to vector<16x32xf32>
    %131 = arith.divf %126, %130 : vector<16x32xf32>
    %132 = vector.broadcast %111 : vector<1x32xf32> to vector<16x32xf32>
    %133 = arith.mulf %131, %132 : vector<16x32xf32>
    %134 = vector.broadcast %113 : vector<1x32xf32> to vector<16x32xf32>
    %135 = arith.addf %133, %134 : vector<16x32xf32>
    %136 = arith.truncf %135 : vector<16x32xf32> to vector<16x32xbf16>
    %c0_52 = arith.constant 0 : index
    %c0_53 = arith.constant 0 : index
    %c0_54 = arith.constant 0 : index
    %137 = vector.load %arg10[%c0_52, %c0_53, %c0_54] : memref<2x32x128xbf16, #tpu.memory_space<vmem>>, vector<1x32x128xbf16>
    %138 = vector.shape_cast %137 : vector<1x32x128xbf16> to vector<32x128xbf16>
    %cst_55 = arith.constant dense<0.000000e+00> : vector<16x128xf32>
    %139 = tpu.matmul %136, %138, %cst_55 {dimension_numbers = #tpu.dot_dimension_numbers<[1], [0], [0], [1], [0, 0, 1, 1], [], []>} : vector<16x32xbf16>, vector<32x128xbf16>, vector<16x128xf32> -> vector<16x128xf32>
    %c0_56 = arith.constant 0 : index
    %c0_57 = arith.constant 0 : index
    %c0_58 = arith.constant 0 : index
    %140 = vector.load %arg11[%c0_56, %c0_57, %c0_58] : memref<2x1x128xf32, #tpu.memory_space<vmem>>, vector<1x1x128xf32>
    %141 = vector.shape_cast %140 : vector<1x1x128xf32> to vector<1x128xf32>
    %142 = vector.broadcast %141 : vector<1x128xf32> to vector<16x128xf32>
    %143 = arith.addf %139, %142 : vector<16x128xf32>
    %cst_59 = arith.constant 5.000000e-01 : f32
    %144 = vector.broadcast %cst_59 : f32 to vector<16x128xf32>
    %145 = arith.mulf %144, %143 : vector<16x128xf32>
    %146 = arith.mulf %143, %143 : vector<16x128xf32>
    %147 = arith.mulf %143, %146 : vector<16x128xf32>
    %cst_60 = arith.constant 4.471500e-02 : f32
    %148 = vector.broadcast %cst_60 : f32 to vector<16x128xf32>
    %149 = arith.mulf %148, %147 : vector<16x128xf32>
    %150 = arith.addf %143, %149 : vector<16x128xf32>
    %cst_61 = arith.constant 0.797884583 : f32
    %151 = vector.broadcast %cst_61 : f32 to vector<16x128xf32>
    %152 = arith.mulf %151, %150 : vector<16x128xf32>
    %153 = math.tanh %152 : vector<16x128xf32>
    %cst_62 = arith.constant 1.000000e+00 : f32
    %154 = vector.broadcast %cst_62 : f32 to vector<16x128xf32>
    %155 = arith.addf %154, %153 : vector<16x128xf32>
    %156 = arith.mulf %145, %155 : vector<16x128xf32>
    %157 = arith.truncf %156 : vector<16x128xf32> to vector<16x128xbf16>
    %c0_63 = arith.constant 0 : index
    %c0_64 = arith.constant 0 : index
    %c0_65 = arith.constant 0 : index
    %158 = vector.load %arg12[%c0_63, %c0_64, %c0_65] : memref<2x128x32xbf16, #tpu.memory_space<vmem>>, vector<1x128x32xbf16>
    %159 = vector.shape_cast %158 : vector<1x128x32xbf16> to vector<128x32xbf16>
    %cst_66 = arith.constant dense<0.000000e+00> : vector<16x32xf32>
    %160 = tpu.matmul %157, %159, %cst_66 {dimension_numbers = #tpu.dot_dimension_numbers<[1], [0], [0], [1], [0, 0, 1, 1], [], []>} : vector<16x128xbf16>, vector<128x32xbf16>, vector<16x32xf32> -> vector<16x32xf32>
    %c0_67 = arith.constant 0 : index
    %c0_68 = arith.constant 0 : index
    %c0_69 = arith.constant 0 : index
    %161 = vector.load %arg13[%c0_67, %c0_68, %c0_69] : memref<2x1x32xf32, #tpu.memory_space<vmem>>, vector<1x1x32xf32>
    %162 = vector.shape_cast %161 : vector<1x1x32xf32> to vector<1x32xf32>
    %163 = vector.broadcast %162 : vector<1x32xf32> to vector<16x32xf32>
    %164 = arith.addf %160, %163 : vector<16x32xf32>
    %165 = arith.addf %109, %164 : vector<16x32xf32>
    %c1 = arith.constant 1 : index
    %c0_70 = arith.constant 0 : index
    %c0_71 = arith.constant 0 : index
    %166 = vector.load %arg6[%c1, %c0_70, %c0_71] : memref<2x1x32xf32, #tpu.memory_space<vmem>>, vector<1x1x32xf32>
    %167 = vector.shape_cast %166 : vector<1x1x32xf32> to vector<1x32xf32>
    %c1_72 = arith.constant 1 : index
    %c0_73 = arith.constant 0 : index
    %c0_74 = arith.constant 0 : index
    %168 = vector.load %arg7[%c1_72, %c0_73, %c0_74] : memref<2x1x32xf32, #tpu.memory_space<vmem>>, vector<1x1x32xf32>
    %169 = vector.shape_cast %168 : vector<1x1x32xf32> to vector<1x32xf32>
    %cst_75 = arith.constant dense<0.000000e+00> : vector<16xf32>
    %170 = vector.multi_reduction <add>, %165, %cst_75 [1] : vector<16x32xf32> to vector<16xf32>
    %171 = vector.shape_cast %170 : vector<16xf32> to vector<16x1xf32>
    %cst_76 = arith.constant 3.200000e+01 : f32
    %172 = vector.broadcast %cst_76 : f32 to vector<16x1xf32>
    %173 = arith.divf %171, %172 : vector<16x1xf32>
    %174 = vector.broadcast %173 : vector<16x1xf32> to vector<16x32xf32>
    %175 = arith.subf %165, %174 : vector<16x32xf32>
    %176 = arith.mulf %175, %175 : vector<16x32xf32>
    %cst_77 = arith.constant dense<0.000000e+00> : vector<16xf32>
    %177 = vector.multi_reduction <add>, %176, %cst_77 [1] : vector<16x32xf32> to vector<16xf32>
    %178 = vector.shape_cast %177 : vector<16xf32> to vector<16x1xf32>
    %cst_78 = arith.constant 3.200000e+01 : f32
    %179 = vector.broadcast %cst_78 : f32 to vector<16x1xf32>
    %180 = arith.divf %178, %179 : vector<16x1xf32>
    %181 = vector.broadcast %173 : vector<16x1xf32> to vector<16x32xf32>
    %182 = arith.subf %165, %181 : vector<16x32xf32>
    %cst_79 = arith.constant 9.99999974E-6 : f32
    %183 = vector.broadcast %cst_79 : f32 to vector<16x1xf32>
    %184 = arith.addf %180, %183 : vector<16x1xf32>
    %185 = math.sqrt %184 : vector<16x1xf32>
    %186 = vector.broadcast %185 : vector<16x1xf32> to vector<16x32xf32>
    %187 = arith.divf %182, %186 : vector<16x32xf32>
    %188 = vector.broadcast %167 : vector<1x32xf32> to vector<16x32xf32>
    %189 = arith.mulf %187, %188 : vector<16x32xf32>
    %190 = vector.broadcast %169 : vector<1x32xf32> to vector<16x32xf32>
    %191 = arith.addf %189, %190 : vector<16x32xf32>
    %192 = arith.truncf %191 : vector<16x32xf32> to vector<16x32xbf16>
    %c1_80 = arith.constant 1 : index
    %c0_81 = arith.constant 0 : index
    %c0_82 = arith.constant 0 : index
    %193 = vector.load %arg3[%c1_80, %c0_81, %c0_82] : memref<2x32x96xbf16, #tpu.memory_space<vmem>>, vector<1x32x96xbf16>
    %194 = vector.shape_cast %193 : vector<1x32x96xbf16> to vector<32x96xbf16>
    %cst_83 = arith.constant dense<0.000000e+00> : vector<16x96xf32>
    %195 = tpu.matmul %192, %194, %cst_83 {dimension_numbers = #tpu.dot_dimension_numbers<[1], [0], [0], [1], [0, 0, 1, 1], [], []>} : vector<16x32xbf16>, vector<32x96xbf16>, vector<16x96xf32> -> vector<16x96xf32>
    %196 = vector.extract_strided_slice %195 {offsets = [0, 0], sizes = [16, 32], strides = [1, 1]} : vector<16x96xf32> to vector<16x32xf32>
    %197 = vector.extract_strided_slice %195 {offsets = [0, 32], sizes = [16, 32], strides = [1, 1]} : vector<16x96xf32> to vector<16x32xf32>
    %198 = vector.extract_strided_slice %195 {offsets = [0, 64], sizes = [16, 32], strides = [1, 1]} : vector<16x96xf32> to vector<16x32xf32>
    %199 = vector.extract_strided_slice %196 {offsets = [0, 0], sizes = [16, 8], strides = [1, 1]} : vector<16x32xf32> to vector<16x8xf32>
    %200 = vector.extract_strided_slice %197 {offsets = [0, 0], sizes = [16, 8], strides = [1, 1]} : vector<16x32xf32> to vector<16x8xf32>
    "tpu.trace_start"() <{level = 10 : i32, message = "qd,kd->qk"}> : () -> ()
    %cst_84 = arith.constant dense<0.000000e+00> : vector<16x16xf32>
    %201 = tpu.matmul %199, %200, %cst_84 {dimension_numbers = #tpu.dot_dimension_numbers<[1], [1], [0], [0], [0, 0, 1, 0], [], []>} : vector<16x8xf32>, vector<16x8xf32>, vector<16x16xf32> -> vector<16x16xf32>
    "tpu.trace_stop"() : () -> ()
    %202 = arith.addf %201, %2 : vector<16x16xf32>
    %cst_85 = arith.constant dense<0xFF800000> : vector<16xf32>
    %203 = vector.multi_reduction <maximumf>, %202, %cst_85 [1] : vector<16x16xf32> to vector<16xf32>
    %204 = vector.shape_cast %203 : vector<16xf32> to vector<16x1xf32>
    %205 = vector.broadcast %204 : vector<16x1xf32> to vector<16x16xf32>
    %206 = arith.subf %202, %205 : vector<16x16xf32>
    %207 = math.exp %206 : vector<16x16xf32>
    %cst_86 = arith.constant dense<0.000000e+00> : vector<16xf32>
    %208 = vector.multi_reduction <add>, %207, %cst_86 [1] : vector<16x16xf32> to vector<16xf32>
    %209 = vector.shape_cast %208 : vector<16xf32> to vector<16x1xf32>
    %210 = tpu.reciprocal %209 {approx = true} : vector<16x1xf32> -> vector<16x1xf32>
    %211 = vector.broadcast %210 : vector<16x1xf32> to vector<16x16xf32>
    %212 = arith.mulf %207, %211 : vector<16x16xf32>
    %213 = vector.extract_strided_slice %198 {offsets = [0, 0], sizes = [16, 8], strides = [1, 1]} : vector<16x32xf32> to vector<16x8xf32>
    %cst_87 = arith.constant dense<0.000000e+00> : vector<16x8xf32>
    %214 = tpu.matmul %212, %213, %cst_87 {dimension_numbers = #tpu.dot_dimension_numbers<[1], [0], [0], [1], [0, 0, 1, 1], [], []>} : vector<16x16xf32>, vector<16x8xf32>, vector<16x8xf32> -> vector<16x8xf32>
    %215 = vector.extract_strided_slice %196 {offsets = [0, 8], sizes = [16, 8], strides = [1, 1]} : vector<16x32xf32> to vector<16x8xf32>
    %216 = vector.extract_strided_slice %197 {offsets = [0, 8], sizes = [16, 8], strides = [1, 1]} : vector<16x32xf32> to vector<16x8xf32>
    "tpu.trace_start"() <{level = 10 : i32, message = "qd,kd->qk"}> : () -> ()
    %cst_88 = arith.constant dense<0.000000e+00> : vector<16x16xf32>
    %217 = tpu.matmul %215, %216, %cst_88 {dimension_numbers = #tpu.dot_dimension_numbers<[1], [1], [0], [0], [0, 0, 1, 0], [], []>} : vector<16x8xf32>, vector<16x8xf32>, vector<16x16xf32> -> vector<16x16xf32>
    "tpu.trace_stop"() : () -> ()
    %218 = arith.addf %217, %2 : vector<16x16xf32>
    %cst_89 = arith.constant dense<0xFF800000> : vector<16xf32>
    %219 = vector.multi_reduction <maximumf>, %218, %cst_89 [1] : vector<16x16xf32> to vector<16xf32>
    %220 = vector.shape_cast %219 : vector<16xf32> to vector<16x1xf32>
    %221 = vector.broadcast %220 : vector<16x1xf32> to vector<16x16xf32>
    %222 = arith.subf %218, %221 : vector<16x16xf32>
    %223 = math.exp %222 : vector<16x16xf32>
    %cst_90 = arith.constant dense<0.000000e+00> : vector<16xf32>
    %224 = vector.multi_reduction <add>, %223, %cst_90 [1] : vector<16x16xf32> to vector<16xf32>
    %225 = vector.shape_cast %224 : vector<16xf32> to vector<16x1xf32>
    %226 = tpu.reciprocal %225 {approx = true} : vector<16x1xf32> -> vector<16x1xf32>
    %227 = vector.broadcast %226 : vector<16x1xf32> to vector<16x16xf32>
    %228 = arith.mulf %223, %227 : vector<16x16xf32>
    %229 = vector.extract_strided_slice %198 {offsets = [0, 8], sizes = [16, 8], strides = [1, 1]} : vector<16x32xf32> to vector<16x8xf32>
    %cst_91 = arith.constant dense<0.000000e+00> : vector<16x8xf32>
    %230 = tpu.matmul %228, %229, %cst_91 {dimension_numbers = #tpu.dot_dimension_numbers<[1], [0], [0], [1], [0, 0, 1, 1], [], []>} : vector<16x16xf32>, vector<16x8xf32>, vector<16x8xf32> -> vector<16x8xf32>
    %231 = vector.extract_strided_slice %196 {offsets = [0, 16], sizes = [16, 8], strides = [1, 1]} : vector<16x32xf32> to vector<16x8xf32>
    %232 = vector.extract_strided_slice %197 {offsets = [0, 16], sizes = [16, 8], strides = [1, 1]} : vector<16x32xf32> to vector<16x8xf32>
    "tpu.trace_start"() <{level = 10 : i32, message = "qd,kd->qk"}> : () -> ()
    %cst_92 = arith.constant dense<0.000000e+00> : vector<16x16xf32>
    %233 = tpu.matmul %231, %232, %cst_92 {dimension_numbers = #tpu.dot_dimension_numbers<[1], [1], [0], [0], [0, 0, 1, 0], [], []>} : vector<16x8xf32>, vector<16x8xf32>, vector<16x16xf32> -> vector<16x16xf32>
    "tpu.trace_stop"() : () -> ()
    %234 = arith.addf %233, %2 : vector<16x16xf32>
    %cst_93 = arith.constant dense<0xFF800000> : vector<16xf32>
    %235 = vector.multi_reduction <maximumf>, %234, %cst_93 [1] : vector<16x16xf32> to vector<16xf32>
    %236 = vector.shape_cast %235 : vector<16xf32> to vector<16x1xf32>
    %237 = vector.broadcast %236 : vector<16x1xf32> to vector<16x16xf32>
    %238 = arith.subf %234, %237 : vector<16x16xf32>
    %239 = math.exp %238 : vector<16x16xf32>
    %cst_94 = arith.constant dense<0.000000e+00> : vector<16xf32>
    %240 = vector.multi_reduction <add>, %239, %cst_94 [1] : vector<16x16xf32> to vector<16xf32>
    %241 = vector.shape_cast %240 : vector<16xf32> to vector<16x1xf32>
    %242 = tpu.reciprocal %241 {approx = true} : vector<16x1xf32> -> vector<16x1xf32>
    %243 = vector.broadcast %242 : vector<16x1xf32> to vector<16x16xf32>
    %244 = arith.mulf %239, %243 : vector<16x16xf32>
    %245 = vector.extract_strided_slice %198 {offsets = [0, 16], sizes = [16, 8], strides = [1, 1]} : vector<16x32xf32> to vector<16x8xf32>
    %cst_95 = arith.constant dense<0.000000e+00> : vector<16x8xf32>
    %246 = tpu.matmul %244, %245, %cst_95 {dimension_numbers = #tpu.dot_dimension_numbers<[1], [0], [0], [1], [0, 0, 1, 1], [], []>} : vector<16x16xf32>, vector<16x8xf32>, vector<16x8xf32> -> vector<16x8xf32>
    %247 = vector.extract_strided_slice %196 {offsets = [0, 24], sizes = [16, 8], strides = [1, 1]} : vector<16x32xf32> to vector<16x8xf32>
    %248 = vector.extract_strided_slice %197 {offsets = [0, 24], sizes = [16, 8], strides = [1, 1]} : vector<16x32xf32> to vector<16x8xf32>
    "tpu.trace_start"() <{level = 10 : i32, message = "qd,kd->qk"}> : () -> ()
    %cst_96 = arith.constant dense<0.000000e+00> : vector<16x16xf32>
    %249 = tpu.matmul %247, %248, %cst_96 {dimension_numbers = #tpu.dot_dimension_numbers<[1], [1], [0], [0], [0, 0, 1, 0], [], []>} : vector<16x8xf32>, vector<16x8xf32>, vector<16x16xf32> -> vector<16x16xf32>
    "tpu.trace_stop"() : () -> ()
    %250 = arith.addf %249, %2 : vector<16x16xf32>
    %cst_97 = arith.constant dense<0xFF800000> : vector<16xf32>
    %251 = vector.multi_reduction <maximumf>, %250, %cst_97 [1] : vector<16x16xf32> to vector<16xf32>
    %252 = vector.shape_cast %251 : vector<16xf32> to vector<16x1xf32>
    %253 = vector.broadcast %252 : vector<16x1xf32> to vector<16x16xf32>
    %254 = arith.subf %250, %253 : vector<16x16xf32>
    %255 = math.exp %254 : vector<16x16xf32>
    %cst_98 = arith.constant dense<0.000000e+00> : vector<16xf32>
    %256 = vector.multi_reduction <add>, %255, %cst_98 [1] : vector<16x16xf32> to vector<16xf32>
    %257 = vector.shape_cast %256 : vector<16xf32> to vector<16x1xf32>
    %258 = tpu.reciprocal %257 {approx = true} : vector<16x1xf32> -> vector<16x1xf32>
    %259 = vector.broadcast %258 : vector<16x1xf32> to vector<16x16xf32>
    %260 = arith.mulf %255, %259 : vector<16x16xf32>
    %261 = vector.extract_strided_slice %198 {offsets = [0, 24], sizes = [16, 8], strides = [1, 1]} : vector<16x32xf32> to vector<16x8xf32>
    %cst_99 = arith.constant dense<0.000000e+00> : vector<16x8xf32>
    %262 = tpu.matmul %260, %261, %cst_99 {dimension_numbers = #tpu.dot_dimension_numbers<[1], [0], [0], [1], [0, 0, 1, 1], [], []>} : vector<16x16xf32>, vector<16x8xf32>, vector<16x8xf32> -> vector<16x8xf32>
    %263 = tpu.concatenate %214, %230, %246, %262 in 1 : vector<16x8xf32>, vector<16x8xf32>, vector<16x8xf32>, vector<16x8xf32> -> vector<16x32xf32>
    %264 = arith.truncf %263 : vector<16x32xf32> to vector<16x32xbf16>
    %c1_100 = arith.constant 1 : index
    %c0_101 = arith.constant 0 : index
    %c0_102 = arith.constant 0 : index
    %265 = vector.load %arg4[%c1_100, %c0_101, %c0_102] : memref<2x32x32xbf16, #tpu.memory_space<vmem>>, vector<1x32x32xbf16>
    %266 = vector.shape_cast %265 : vector<1x32x32xbf16> to vector<32x32xbf16>
    %cst_103 = arith.constant dense<0.000000e+00> : vector<16x32xf32>
    %267 = tpu.matmul %264, %266, %cst_103 {dimension_numbers = #tpu.dot_dimension_numbers<[1], [0], [0], [1], [0, 0, 1, 1], [], []>} : vector<16x32xbf16>, vector<32x32xbf16>, vector<16x32xf32> -> vector<16x32xf32>
    %268 = arith.addf %165, %267 : vector<16x32xf32>
    %c1_104 = arith.constant 1 : index
    %c0_105 = arith.constant 0 : index
    %c0_106 = arith.constant 0 : index
    %269 = vector.load %arg5[%c1_104, %c0_105, %c0_106] : memref<2x1x32xf32, #tpu.memory_space<vmem>>, vector<1x1x32xf32>
    %270 = vector.shape_cast %269 : vector<1x1x32xf32> to vector<1x32xf32>
    %271 = vector.broadcast %270 : vector<1x32xf32> to vector<16x32xf32>
    %272 = arith.addf %268, %271 : vector<16x32xf32>
    %c1_107 = arith.constant 1 : index
    %c0_108 = arith.constant 0 : index
    %c0_109 = arith.constant 0 : index
    %273 = vector.load %arg8[%c1_107, %c0_108, %c0_109] : memref<2x1x32xf32, #tpu.memory_space<vmem>>, vector<1x1x32xf32>
    %274 = vector.shape_cast %273 : vector<1x1x32xf32> to vector<1x32xf32>
    %c1_110 = arith.constant 1 : index
    %c0_111 = arith.constant 0 : index
    %c0_112 = arith.constant 0 : index
    %275 = vector.load %arg9[%c1_110, %c0_111, %c0_112] : memref<2x1x32xf32, #tpu.memory_space<vmem>>, vector<1x1x32xf32>
    %276 = vector.shape_cast %275 : vector<1x1x32xf32> to vector<1x32xf32>
    %cst_113 = arith.constant dense<0.000000e+00> : vector<16xf32>
    %277 = vector.multi_reduction <add>, %272, %cst_113 [1] : vector<16x32xf32> to vector<16xf32>
    %278 = vector.shape_cast %277 : vector<16xf32> to vector<16x1xf32>
    %cst_114 = arith.constant 3.200000e+01 : f32
    %279 = vector.broadcast %cst_114 : f32 to vector<16x1xf32>
    %280 = arith.divf %278, %279 : vector<16x1xf32>
    %281 = vector.broadcast %280 : vector<16x1xf32> to vector<16x32xf32>
    %282 = arith.subf %272, %281 : vector<16x32xf32>
    %283 = arith.mulf %282, %282 : vector<16x32xf32>
    %cst_115 = arith.constant dense<0.000000e+00> : vector<16xf32>
    %284 = vector.multi_reduction <add>, %283, %cst_115 [1] : vector<16x32xf32> to vector<16xf32>
    %285 = vector.shape_cast %284 : vector<16xf32> to vector<16x1xf32>
    %cst_116 = arith.constant 3.200000e+01 : f32
    %286 = vector.broadcast %cst_116 : f32 to vector<16x1xf32>
    %287 = arith.divf %285, %286 : vector<16x1xf32>
    %288 = vector.broadcast %280 : vector<16x1xf32> to vector<16x32xf32>
    %289 = arith.subf %272, %288 : vector<16x32xf32>
    %cst_117 = arith.constant 9.99999974E-6 : f32
    %290 = vector.broadcast %cst_117 : f32 to vector<16x1xf32>
    %291 = arith.addf %287, %290 : vector<16x1xf32>
    %292 = math.sqrt %291 : vector<16x1xf32>
    %293 = vector.broadcast %292 : vector<16x1xf32> to vector<16x32xf32>
    %294 = arith.divf %289, %293 : vector<16x32xf32>
    %295 = vector.broadcast %274 : vector<1x32xf32> to vector<16x32xf32>
    %296 = arith.mulf %294, %295 : vector<16x32xf32>
    %297 = vector.broadcast %276 : vector<1x32xf32> to vector<16x32xf32>
    %298 = arith.addf %296, %297 : vector<16x32xf32>
    %299 = arith.truncf %298 : vector<16x32xf32> to vector<16x32xbf16>
    %c1_118 = arith.constant 1 : index
    %c0_119 = arith.constant 0 : index
    %c0_120 = arith.constant 0 : index
    %300 = vector.load %arg10[%c1_118, %c0_119, %c0_120] : memref<2x32x128xbf16, #tpu.memory_space<vmem>>, vector<1x32x128xbf16>
    %301 = vector.shape_cast %300 : vector<1x32x128xbf16> to vector<32x128xbf16>
    %cst_121 = arith.constant dense<0.000000e+00> : vector<16x128xf32>
    %302 = tpu.matmul %299, %301, %cst_121 {dimension_numbers = #tpu.dot_dimension_numbers<[1], [0], [0], [1], [0, 0, 1, 1], [], []>} : vector<16x32xbf16>, vector<32x128xbf16>, vector<16x128xf32> -> vector<16x128xf32>
    %c1_122 = arith.constant 1 : index
    %c0_123 = arith.constant 0 : index
    %c0_124 = arith.constant 0 : index
    %303 = vector.load %arg11[%c1_122, %c0_123, %c0_124] : memref<2x1x128xf32, #tpu.memory_space<vmem>>, vector<1x1x128xf32>
    %304 = vector.shape_cast %303 : vector<1x1x128xf32> to vector<1x128xf32>
    %305 = vector.broadcast %304 : vector<1x128xf32> to vector<16x128xf32>
    %306 = arith.addf %302, %305 : vector<16x128xf32>
    %cst_125 = arith.constant 5.000000e-01 : f32
    %307 = vector.broadcast %cst_125 : f32 to vector<16x128xf32>
    %308 = arith.mulf %307, %306 : vector<16x128xf32>
    %309 = arith.mulf %306, %306 : vector<16x128xf32>
    %310 = arith.mulf %306, %309 : vector<16x128xf32>
    %cst_126 = arith.constant 4.471500e-02 : f32
    %311 = vector.broadcast %cst_126 : f32 to vector<16x128xf32>
    %312 = arith.mulf %311, %310 : vector<16x128xf32>
    %313 = arith.addf %306, %312 : vector<16x128xf32>
    %cst_127 = arith.constant 0.797884583 : f32
    %314 = vector.broadcast %cst_127 : f32 to vector<16x128xf32>
    %315 = arith.mulf %314, %313 : vector<16x128xf32>
    %316 = math.tanh %315 : vector<16x128xf32>
    %cst_128 = arith.constant 1.000000e+00 : f32
    %317 = vector.broadcast %cst_128 : f32 to vector<16x128xf32>
    %318 = arith.addf %317, %316 : vector<16x128xf32>
    %319 = arith.mulf %308, %318 : vector<16x128xf32>
    %320 = arith.truncf %319 : vector<16x128xf32> to vector<16x128xbf16>
    %c1_129 = arith.constant 1 : index
    %c0_130 = arith.constant 0 : index
    %c0_131 = arith.constant 0 : index
    %321 = vector.load %arg12[%c1_129, %c0_130, %c0_131] : memref<2x128x32xbf16, #tpu.memory_space<vmem>>, vector<1x128x32xbf16>
    %322 = vector.shape_cast %321 : vector<1x128x32xbf16> to vector<128x32xbf16>
    %cst_132 = arith.constant dense<0.000000e+00> : vector<16x32xf32>
    %323 = tpu.matmul %320, %322, %cst_132 {dimension_numbers = #tpu.dot_dimension_numbers<[1], [0], [0], [1], [0, 0, 1, 1], [], []>} : vector<16x128xbf16>, vector<128x32xbf16>, vector<16x32xf32> -> vector<16x32xf32>
    %c1_133 = arith.constant 1 : index
    %c0_134 = arith.constant 0 : index
    %c0_135 = arith.constant 0 : index
    %324 = vector.load %arg13[%c1_133, %c0_134, %c0_135] : memref<2x1x32xf32, #tpu.memory_space<vmem>>, vector<1x1x32xf32>
    %325 = vector.shape_cast %324 : vector<1x1x32xf32> to vector<1x32xf32>
    %326 = vector.broadcast %325 : vector<1x32xf32> to vector<16x32xf32>
    %327 = arith.addf %323, %326 : vector<16x32xf32>
    %328 = arith.addf %272, %327 : vector<16x32xf32>
    %c0_136 = arith.constant 0 : index
    %c0_137 = arith.constant 0 : index
    %329 = vector.load %arg14[%c0_136, %c0_137] : memref<1x32xf32, #tpu.memory_space<vmem>>, vector<1x32xf32>
    %c0_138 = arith.constant 0 : index
    %c0_139 = arith.constant 0 : index
    %330 = vector.load %arg15[%c0_138, %c0_139] : memref<1x32xf32, #tpu.memory_space<vmem>>, vector<1x32xf32>
    %cst_140 = arith.constant dense<0.000000e+00> : vector<16xf32>
    %331 = vector.multi_reduction <add>, %328, %cst_140 [1] : vector<16x32xf32> to vector<16xf32>
    %332 = vector.shape_cast %331 : vector<16xf32> to vector<16x1xf32>
    %cst_141 = arith.constant 3.200000e+01 : f32
    %333 = vector.broadcast %cst_141 : f32 to vector<16x1xf32>
    %334 = arith.divf %332, %333 : vector<16x1xf32>
    %335 = vector.broadcast %334 : vector<16x1xf32> to vector<16x32xf32>
    %336 = arith.subf %328, %335 : vector<16x32xf32>
    %337 = arith.mulf %336, %336 : vector<16x32xf32>
    %cst_142 = arith.constant dense<0.000000e+00> : vector<16xf32>
    %338 = vector.multi_reduction <add>, %337, %cst_142 [1] : vector<16x32xf32> to vector<16xf32>
    %339 = vector.shape_cast %338 : vector<16xf32> to vector<16x1xf32>
    %cst_143 = arith.constant 3.200000e+01 : f32
    %340 = vector.broadcast %cst_143 : f32 to vector<16x1xf32>
    %341 = arith.divf %339, %340 : vector<16x1xf32>
    %342 = vector.broadcast %334 : vector<16x1xf32> to vector<16x32xf32>
    %343 = arith.subf %328, %342 : vector<16x32xf32>
    %cst_144 = arith.constant 9.99999974E-6 : f32
    %344 = vector.broadcast %cst_144 : f32 to vector<16x1xf32>
    %345 = arith.addf %341, %344 : vector<16x1xf32>
    %346 = math.sqrt %345 : vector<16x1xf32>
    %347 = vector.broadcast %346 : vector<16x1xf32> to vector<16x32xf32>
    %348 = arith.divf %343, %347 : vector<16x32xf32>
    %349 = vector.broadcast %329 : vector<1x32xf32> to vector<16x32xf32>
    %350 = arith.mulf %348, %349 : vector<16x32xf32>
    %351 = vector.broadcast %330 : vector<1x32xf32> to vector<16x32xf32>
    %352 = arith.addf %350, %351 : vector<16x32xf32>
    %353 = arith.truncf %352 : vector<16x32xf32> to vector<16x32xbf16>
    %c0_145 = arith.constant 0 : index
    %c0_146 = arith.constant 0 : index
    %354 = vector.load %arg16[%c0_145, %c0_146] : memref<32x256xbf16, #tpu.memory_space<vmem>>, vector<32x256xbf16>
    %cst_147 = arith.constant dense<0.000000e+00> : vector<16x256xf32>
    %355 = tpu.matmul %353, %354, %cst_147 {dimension_numbers = #tpu.dot_dimension_numbers<[1], [0], [0], [1], [0, 0, 1, 1], [], []>} : vector<16x32xbf16>, vector<32x256xbf16>, vector<16x256xf32> -> vector<16x256xf32>
    %356 = vector.shape_cast %355 : vector<16x256xf32> to vector<2x8x256xf32>
    %c0_148 = arith.constant 0 : index
    %c0_149 = arith.constant 0 : index
    %c0_150 = arith.constant 0 : index
    %357 = vector.load %arg17[%c0_148, %c0_149, %c0_150] : memref<2x8x256xf32, #tpu.memory_space<vmem>>, vector<2x8x256xf32>
    tpu.vector_store %arg17[%c0_148, %c0_149, %c0_150], %356 {strides = array<i32>} : memref<2x8x256xf32, #tpu.memory_space<vmem>>, vector<2x8x256xf32>,
    return
  }
  func.func @transform_0(%arg0: i32) -> (i32, i32, i32) {
    %c0_i32 = arith.constant 0 : i32
    %c0_i32_0 = arith.constant 0 : i32
    %c0_i32_1 = arith.constant 0 : i32
    %c0_i32_2 = arith.constant 0 : i32
    return %c0_i32, %c0_i32_0, %c0_i32_1 : i32, i32, i32
  }
  func.func @transform_1(%arg0: i32) -> (i32, i32) {
    %c0_i32 = arith.constant 0 : i32
    %c0_i32_0 = arith.constant 0 : i32
    %c0_i32_1 = arith.constant 0 : i32
    return %c0_i32, %c0_i32_0 : i32, i32
  }
  func.func @transform_2(%arg0: i32) -> (i32, i32, i32) {
    %c0_i32 = arith.constant 0 : i32
    %c0_i32_0 = arith.constant 0 : i32
    %c0_i32_1 = arith.constant 0 : i32
    %c0_i32_2 = arith.constant 0 : i32
    return %c0_i32, %c0_i32_0, %c0_i32_1 : i32, i32, i32
  }
  func.func @transform_3(%arg0: i32) -> (i32, i32, i32) {
    %c0_i32 = arith.constant 0 : i32
    %c0_i32_0 = arith.constant 0 : i32
    %c0_i32_1 = arith.constant 0 : i32
    %c0_i32_2 = arith.constant 0 : i32
    return %c0_i32, %c0_i32_0, %c0_i32_1 : i32, i32, i32
  }
  func.func @transform_4(%arg0: i32) -> (i32, i32, i32) {
    %c0_i32 = arith.constant 0 : i32
    %c0_i32_0 = arith.constant 0 : i32
    %c0_i32_1 = arith.constant 0 : i32
    %c0_i32_2 = arith.constant 0 : i32
    return %c0_i32, %c0_i32_0, %c0_i32_1 : i32, i32, i32
  }
  func.func @transform_5(%arg0: i32) -> (i32, i32, i32) {
    %c0_i32 = arith.constant 0 : i32
    %c0_i32_0 = arith.constant 0 : i32
    %c0_i32_1 = arith.constant 0 : i32
    %c0_i32_2 = arith.constant 0 : i32
    return %c0_i32, %c0_i32_0, %c0_i32_1 : i32, i32, i32
  }
  func.func @transform_6(%arg0: i32) -> (i32, i32, i32) {
    %c0_i32 = arith.constant 0 : i32
    %c0_i32_0 = arith.constant 0 : i32
    %c0_i32_1 = arith.constant 0 : i32
    %c0_i32_2 = arith.constant 0 : i32
    return %c0_i32, %c0_i32_0, %c0_i32_1 : i32, i32, i32
  }
  func.func @transform_7(%arg0: i32) -> (i32, i32, i32) {
    %c0_i32 = arith.constant 0 : i32
    %c0_i32_0 = arith.constant 0 : i32
    %c0_i32_1 = arith.constant 0 : i32
    %c0_i32_2 = arith.constant 0 : i32
    return %c0_i32, %c0_i32_0, %c0_i32_1 : i32, i32, i32
  }
  func.func @transform_8(%arg0: i32) -> (i32, i32, i32) {
    %c0_i32 = arith.constant 0 : i32
    %c0_i32_0 = arith.constant 0 : i32
    %c0_i32_1 = arith.constant 0 : i32
    %c0_i32_2 = arith.constant 0 : i32
    return %c0_i32, %c0_i32_0, %c0_i32_1 : i32, i32, i32
  }
  func.func @transform_9(%arg0: i32) -> (i32, i32, i32) {
    %c0_i32 = arith.constant 0 : i32
    %c0_i32_0 = arith.constant 0 : i32
    %c0_i32_1 = arith.constant 0 : i32
    %c0_i32_2 = arith.constant 0 : i32
    return %c0_i32, %c0_i32_0, %c0_i32_1 : i32, i32, i32
  }
  func.func @transform_10(%arg0: i32) -> (i32, i32, i32) {
    %c0_i32 = arith.constant 0 : i32
    %c0_i32_0 = arith.constant 0 : i32
    %c0_i32_1 = arith.constant 0 : i32
    %c0_i32_2 = arith.constant 0 : i32
    return %c0_i32, %c0_i32_0, %c0_i32_1 : i32, i32, i32
  }
  func.func @transform_11(%arg0: i32) -> (i32, i32, i32) {
    %c0_i32 = arith.constant 0 : i32
    %c0_i32_0 = arith.constant 0 : i32
    %c0_i32_1 = arith.constant 0 : i32
    %c0_i32_2 = arith.constant 0 : i32
    return %c0_i32, %c0_i32_0, %c0_i32_1 : i32, i32, i32
  }
  func.func @transform_12(%arg0: i32) -> (i32, i32, i32) {
    %c0_i32 = arith.constant 0 : i32
    %c0_i32_0 = arith.constant 0 : i32
    %c0_i32_1 = arith.constant 0 : i32
    %c0_i32_2 = arith.constant 0 : i32
    return %c0_i32, %c0_i32_0, %c0_i32_1 : i32, i32, i32
  }
  func.func @transform_13(%arg0: i32) -> (i32, i32) {
    %c0_i32 = arith.constant 0 : i32
    %c0_i32_0 = arith.constant 0 : i32
    %c0_i32_1 = arith.constant 0 : i32
    return %c0_i32, %c0_i32_0 : i32, i32
  }
  func.func @transform_14(%arg0: i32) -> (i32, i32) {
    %c0_i32 = arith.constant 0 : i32
    %c0_i32_0 = arith.constant 0 : i32
    %c0_i32_1 = arith.constant 0 : i32
    return %c0_i32, %c0_i32_0 : i32, i32
  }
  func.func @transform_15(%arg0: i32) -> (i32, i32) {
    %c0_i32 = arith.constant 0 : i32
    %c0_i32_0 = arith.constant 0 : i32
    %c0_i32_1 = arith.constant 0 : i32
    return %c0_i32, %c0_i32_0 : i32, i32
  }
  func.func @transform_16(%arg0: i32) -> (i32, i32, i32) {
    %c0_i32 = arith.constant 0 : i32
    %c0_i32_0 = arith.constant 0 : i32
    %c0_i32_1 = arith.constant 0 : i32
    %c0_i32_2 = arith.constant 0 : i32
    return %c0_i32, %c0_i32_0, %c0_i32_1 : i32, i32, i32
  }
}

</mosaic_0001>

<bundles_post_ra>
// kernel: tpu_custom_call.1
= control target key start
LH: loop header
LB: loop body
LE: loop exit
PB: predicated region body
PF: predicated region fallthrough
CT: control target
= control target key end

     0   :  { %s3070_s0 = inlined_call_operand.vmem [shape: f32[2,8,32], index: 0, kind: input, shape index: {}]   ;;  %s3071_s1 = inlined_call_operand.vmem [shape: f32[16,16], index: 1, kind: input, shape index: {}]   ;;  %s3072_s2 = inlined_call_operand.vmem [shape: bf16[2,32,96], index: 2, kind: input, shape index: {}]   ;;  %s3073_s3 = inlined_call_operand.vmem [shape: bf16[2,32,32], index: 3, kind: input, shape index: {}]   ;;  %s3074_s4 = inlined_call_operand.vmem [shape: f32[2,1,32], index: 4, kind: input, shape index: {}]   ;;  %s3075_s5 = inlined_call_operand.hbm [shape: f32[2,1,32], index: 5, kind: input, shape index: {}]   ;;  %s3076_s6 = inlined_call_operand.vmem [shape: f32[2,1,32], index: 6, kind: input, shape index: {}]   ;;  %s3077_s7 = inlined_call_operand.hbm [shape: f32[2,1,32], index: 7, kind: input, shape index: {}]   ;;  %s3078_s8 = inlined_call_operand.vmem [shape: f32[2,1,32], index: 8, kind: input, shape index: {}]   ;;  %s3079_s9 = inlined_call_operand.vmem [shape: bf16[2,32,128], index: 9, kind: input, shape index: {}]   ;;  %s3080_s10 = inlined_call_operand.vmem [shape: f32[2,1,128], index: 10, kind: input, shape index: {}]   ;;  %s3081_s11 = inlined_call_operand.vmem [shape: bf16[2,128,32], index: 11, kind: input, shape index: {}]   ;;  %s3082_s12 = inlined_call_operand.vmem [shape: f32[2,1,32], index: 12, kind: input, shape index: {}]   ;;  %s3083_s13 = inlined_call_operand.vmem [shape: f32[1,32], index: 13, kind: input, shape index: {}]   ;;  %s3084_s14 = inlined_call_operand.vmem [shape: f32[1,32], index: 14, kind: input, shape index: {}]   ;;  %s3085_s15 = inlined_call_operand.vmem [shape: bf16[32,256], index: 15, kind: input, shape index: {}]   ;;  %s3086_s16 = inlined_call_operand.hbm [shape: f32[2,8,256], index: 16, kind: output, shape index: {}]  }
   0x1   :  { %3097 = sst [smem:[#allocation11_spill]] %s3070_s0 }
   0x2   :  { %21 = vsyncpa [#allocation3], 0 }
   0x3   :  { %22 = vsyncpa [#allocation6], 0 }
   0x4   :  { %23 = vsyncpa [#allocation4], 0  ;;  %s38_s23 = sshll.u32 %s3075_s5, 4  ;;  %s2440_s24 = smov [#allocation2]   ;;  %s39_s23 = int_to_ptr.hbm [resolvable:$true] %s38_s23 }
   0x5   :  { %s40_s25 = sshll.u32 %s2440_s24, 4  ;;  %s53_s28 = sshll.u32 %s3077_s7, 4  ;;  %s41_s25 = int_to_ptr.vmem [resolvable:$true] %s40_s25  ;;  %s54_s28 = int_to_ptr.hbm [resolvable:$true] %s53_s28 }
   0x6   :  { %s3090_s29 = smov 16   ;;  %s2442_s30 = smov 1  }
   0x7   :  { %46 = dma.hbm_to_vmem [thread:$0]  %s39_s23, 32, %s41_s25, [#allocation3], %s3090_s29, %s3090_s29, %s2442_s30  }
   0x8   :  { %s2443_s0 = smov [#allocation5]  }
   0x9   :  { %s55_s17 = sshll.u32 %s2443_s0, 4  ;;  %s56_s17 = int_to_ptr.vmem [resolvable:$true] %s55_s17 }
   0xa   :  { %61 = dma.hbm_to_vmem [thread:$0]  %s54_s28, 32, %s56_s17, [#allocation6], %s3090_s29, %s3090_s29, %s2442_s30  }
   0xb   :  { %2434 = dma.done.wait [#allocation3], 32  }
   0xc   :  { %2435 = vsyncadd [#allocation3], 4294967264 }
   0xd   :  { %2436 = dma.done.wait [#allocation6], 32  }
   0xe   :  { %2437 = vsyncadd [#allocation6], 4294967264  ;;  %vm93_vm0 = vcmask 261120   ;;  %s3098_s7 = sld [smem:[#allocation11_spill]]  ;;  %v2444_v4 = vmov 32.0   ;;  %v2109_v21 = vld [vmem:[%s3072_s2 + $0x8] sm:$0xff] }
   0xf   :  { %2246 = vrcp.f32 %v2444_v4  ;;  %213 = vmatpush.bf16.msra.mxu0 %v2109_v21  ;;  %v2108_v23 = vld [vmem:[%s3072_s2] sm:$0xff]  ;;  %s2445_s27 = smov 88   ;;  %s2446_s28 = smov 96   ;;  %vm227_vm14 = vcmask 64512   ;;  %vm259_vm15 = vcmask 130048  }
  0x10   :  { %s2447_s30 = smov 120   ;;  %v2620_v21 = vld [vmem:[%s3071_s1] sm:$0xff]  ;;  %s2449_s19 = smov 104  }
  0x11   :  { %s2450_s20 = smov 72   ;;  %s2451_s21 = smov 80  }
  0x12   :  { %s3095_s22 = smov 112   ;;  %s3094_s23 = smov 56  }
  0x13   :  { %214 = vmatpush.bf16.msra.mxu0 %v2108_v23  ;;  %s3093_s24 = smov 48   ;;  %s3088_s25 = smov 40  }
  0x14   :  { %v2558_v0 = vld [vmem:[%s3098_s7] sm:$0xff]  ;;  %v2565_v2 = vld [vmem:[%s3098_s7 + $0x8] sm:$0xff]  ;;  %s2448_s7 = smov 64   ;;  %s3092_s26 = smov 8  }
  0x15   :  { %v94_v1 = vsel %vm93_vm0, %v2558_v0, 0.0  ;;  %v97_v3 = vsel %vm93_vm0, %v2565_v2, 0.0  ;;  %v2247_v5 = vpop.eup %2246  ;;  %s3089_s0 = smov 24   ;;  %s3105_s5 = smov 24  }
  0x16   :  { %95 = vadd.xlane.f32.xlu0 %v94_v1  ;;  %v101_v6 = vmul.f32 32.0, %v2247_v5  ;;  %vm105_vm1 = vweird.f32 %v2247_v5  ;;  %s1877_s17 = sshll.u32 %s3086_s16, 4  ;;  %s1878_s17 = int_to_ptr.hbm [resolvable:$true] %s1877_s17 }
  0x18   :  { %v102_v7 = vsub.f32 1.0, %v101_v6 }
  0x1a   :  { %v103_v8 = vmul.f32 %v2247_v5, %v102_v7 }
  0x1c   :  { %v104_v9 = vadd.f32 %v2247_v5, %v103_v8 }
  0x1e   :  { %98 = vadd.xlane.f32.xlu0 %v97_v3  ;;  %v2569_v10 = vsel %vm105_vm1, %v2247_v5, %v104_v9  ;;  %v2230_v5 = vld [vmem:[#allocation2] ss:$0 sm:$0xff]  ;;  %vm633_vm1 = vcmask 195584  }
  0x89   :  { %v96_v11 = vpop.xlane.xlu0 %95 }
  0x8a   :  { %v107_v12 = vmul.f32 %v2569_v10, %v96_v11 }
  0x8c   :  { %v2573_v13 = vsub.f32 %v2558_v0, %v107_v12  ;;  %v2231_v12 = vld [vmem:[%s3076_s6] ss:$0 sm:$0xff] }
  0x8e   :  { %v111_v14 = vmul.f32 %v2573_v13, %v2573_v13 }
  0x90   :  { %v113_v15 = vsel %vm93_vm0, %v111_v14, 0.0 }
  0x91   :  { %114 = vadd.xlane.f32.xlu1 %v113_v15  ;;  %v99_v16 = vpop.xlane.xlu0 %98 }
  0x92   :  { %v108_v17 = vmul.f32 %v2569_v10, %v99_v16 }
  0x94   :  { %v2580_v18 = vsub.f32 %v2565_v2, %v108_v17 }
  0x96   :  { %v112_v19 = vmul.f32 %v2580_v18, %v2580_v18 }
  0x98   :  { %v116_v20 = vsel %vm93_vm0, %v112_v19, 0.0 }
  0x99   :  { %117 = vadd.xlane.f32.xlu1 %v116_v20 }
 0x104   :  { %v115_v22 = vpop.xlane.xlu1 %114 }
 0x105   :  { %v119_v24 = vmul.f32 %v115_v22, %v2569_v10 }
 0x107   :  { %v121_v25 = vadd.f32 1e-05, %v119_v24 }
 0x109   :  { %2248 = vrsqrt.f32 %v121_v25  ;;  %vm130_vm2 = vcmp.eq.f32.partialorder %v121_v25, inf  ;;  %v133_v39 = vand.u32 2147483648, %v121_v25  ;;  %vm132_vm3 = vcmp.eq.f32.partialorder %v121_v25, 0.0 }
 0x10c   :  { %v118_v26 = vpop.xlane.xlu1 %117 }
 0x10d   :  { %v120_v27 = vmul.f32 %v118_v26, %v2569_v10 }
 0x10f   :  { %v2249_v28 = vpop.eup %2248  ;;  %v122_v29 = vadd.f32 1e-05, %v120_v27 }
 0x110   :  { %v124_v30 = vmul.f32 %v2249_v28, %v121_v25 }
 0x111   :  { %2250 = vrsqrt.f32 %v122_v29  ;;  %vm142_vm4 = vcmp.eq.f32.partialorder %v122_v29, inf  ;;  %v145_v46 = vand.u32 2147483648, %v122_v29  ;;  %vm144_vm5 = vcmp.eq.f32.partialorder %v122_v29, 0.0 }
 0x112   :  { %v125_v31 = vmul.f32 %v2249_v28, %v124_v30 }
 0x114   :  { %v126_v32 = vmul.f32 0.5, %v125_v31 }
 0x116   :  { %v127_v33 = vsub.f32 1.5, %v126_v32 }
 0x117   :  { %v2251_v34 = vpop.eup %2250 }
 0x118   :  { %v128_v35 = vmul.f32 %v2249_v28, %v127_v33  ;;  %v136_v36 = vmul.f32 %v2251_v34, %v122_v29 }
 0x11a   :  { %v129_v37 = vmul.f32 %v128_v35, %v121_v25  ;;  %v137_v38 = vmul.f32 %v2251_v34, %v136_v36 }
 0x11c   :  { %v138_v40 = vmul.f32 0.5, %v137_v38  ;;  %v131_v41 = vsel %vm130_vm2, %v121_v25, %v129_v37  ;;  %v2627_v25 = vld [vmem:[%s3071_s1 + $0x8] sm:$0xff] }
 0x11d   :  { %v134_v42 = vsel %vm132_vm3, %v133_v39, %v131_v41 }
 0x11e   :  { %v139_v43 = vsub.f32 1.5, %v138_v40  ;;  %2252 = vrcp.f32 %v134_v42  ;;  %v158_v53 = vand.u32 2147483648, %v134_v42  ;;  %vm152_vm7 = vweird.f32 %v134_v42 }
 0x11f   :  { %v156_v55 = vand.u32 2147483647, %v134_v42 }
 0x120   :  { %v140_v44 = vmul.f32 %v2251_v34, %v139_v43  ;;  %v159_v59 = vor.u32 1.1754944e-38, %v158_v53 }
 0x121   :  { %vm157_vm9 = vcmp.eq.f32.partialorder %v156_v55, 8.507059e+37 }
 0x122   :  { %v141_v45 = vmul.f32 %v140_v44, %v122_v29 }
 0x124   :  { %v2253_v47 = vpop.eup %2252  ;;  %v143_v48 = vsel %vm142_vm4, %v122_v29, %v141_v45 }
 0x125   :  { %v146_v49 = vsel %vm144_vm5, %v145_v46, %v143_v48  ;;  %v148_v50 = vmul.f32 %v2253_v47, %v134_v42  ;;  %vm153_vm6 = vweird.f32 %v2253_v47 }
 0x126   :  { %2254 = vrcp.f32 %v146_v49  ;;  %vm154_vm8 = vmor %vm152_vm7, %vm153_vm6  ;;  %v173_v62 = vand.u32 2147483648, %v146_v49  ;;  %v171_v1 = vand.u32 2147483647, %v146_v49  ;;  %vm167_vm11 = vweird.f32 %v146_v49 }
 0x127   :  { %v149_v51 = vsub.f32 1.0, %v148_v50 }
 0x128   :  { %v174_v6 = vor.u32 1.1754944e-38, %v173_v62  ;;  %vm172_vm13 = vcmp.eq.f32.partialorder %v171_v1, 8.507059e+37 }
 0x129   :  { %v150_v52 = vmul.f32 %v2253_v47, %v149_v51 }
 0x12b   :  { %v151_v54 = vadd.f32 %v2253_v47, %v150_v52 }
 0x12c   :  { %v2255_v56 = vpop.eup %2254 }
 0x12d   :  { %v155_v57 = vsel %vm154_vm8, %v2253_v47, %v151_v54  ;;  %v163_v58 = vmul.f32 %v2255_v56, %v146_v49  ;;  %vm168_vm10 = vweird.f32 %v2255_v56 }
 0x12e   :  { %v160_v61 = vsel %vm157_vm9, %v159_v59, %v155_v57  ;;  %vm169_vm12 = vmor %vm167_vm11, %vm168_vm10 }
 0x12f   :  { %v164_v60 = vsub.f32 1.0, %v163_v58  ;;  %v161_v3 = vmul.f32 %v160_v61, %v2573_v13 }
 0x131   :  { %v165_v63 = vmul.f32 %v2255_v56, %v164_v60  ;;  %v180_v11 = vmul.f32 %v2230_v5, %v161_v3 }
 0x133   :  { %v166_v4 = vadd.f32 %v2255_v56, %v165_v63  ;;  %v185_v15 = vadd.f32 %v2231_v12, %v180_v11 }
 0x135   :  { %v170_v7 = vsel %vm169_vm12, %v2255_v56, %v166_v4 }
 0x136   :  { %v175_v8 = vsel %vm172_vm13, %v174_v6, %v170_v7 }
 0x137   :  { %v176_v9 = vmul.f32 %v175_v8, %v2580_v18 }
 0x139   :  { %v181_v14 = vmul.f32 %v2230_v5, %v176_v9 }
 0x13b   :  { %v186_v16 = vadd.f32 %v2231_v12, %v181_v14 }
 0x13d   :  { %v187_v17 = vpack.c.bf16 %v186_v16, %v185_v15 }
 0x13f   :  { %1899 = vmatmul.msk.bf16.vlgmr.msra.gmra.mxu0 %vm93_vm0, %v187_v17 }
 0x1bc   :  { %v2599_v13 = vpop.f32.mrf.mxu0 }
 0x1c4   :  { %v2601_v19 = vpop.f32.mrf.mxu0 }
 0x1c5   :  { %323 = vrot.lane.b32.xlu1 %v2601_v19, %s2445_s27  ;;  %225 = vrot.lane.b32.xlu2 %v2601_v19, %s2446_s28  ;;  %v2633_v29 = vpack.i.bf16 %v2599_v13, %v2601_v19 }
 0x1cd   :  { %319 = vrot.lane.b32.xlu1 %v2601_v19, %s2447_s30  ;;  %223 = vrot.lane.b32.xlu2 %v2599_v13, %s2446_s28 }
 0x21f   :  { %v226_v18 = vpop.permute.xlu2 %225 }
 0x220   :  { %1900 = vmatpush.xpose.msk.msra.mxu1 %vm227_vm14, %v226_v18 }
 0x227   :  { %v224_v20 = vpop.permute.xlu2 %223 }
 0x228   :  { %1901 = vmatpush.xpose.msk.msra.mxu1 %vm227_vm14, %v224_v20 }
 0x22b   :  { %1902 = vmatmul.msk.f32.vlgmr.msra.gmra.mxu1 %vm227_vm14, %v2599_v13 }
 0x233   :  { %1903 = vmatmul.msk.f32.gmra.mxu1 %vm227_vm14, %v2601_v19 }
 0x237   :  { %v324_v30 = vpop.permute.xlu1 %323 }
 0x23f   :  { %v320_v31 = vpop.permute.xlu1 %319 }
 0x2a8   :  { %v253_v22 = vpop.f32.mrf.mxu1 }
 0x2a9   :  { %v254_v23 = vadd.f32 %v253_v22, %v2620_v21 }
 0x2ab   :  { %v260_v24 = vsel %vm259_vm15, %v254_v23, -inf }
 0x2ac   :  { %261 = vmax.xlane.f32.xlu0 %v260_v24 }
 0x2b0   :  { %v256_v26 = vpop.f32.mrf.mxu1 }
 0x2b1   :  { %v257_v27 = vadd.f32 %v256_v26, %v2627_v25 }
 0x2b3   :  { %v263_v28 = vsel %vm259_vm15, %v257_v27, -inf }
 0x2b4   :  { %264 = vmax.xlane.f32.xlu1 %v263_v28 }
 0x2c0   :  { %2161 = vrot.lane.b32.xlu0 %v2633_v29, %s2448_s7 }
 0x2c8   :  { %321 = vrot.lane.b32.xlu0 %v2599_v13, %s2445_s27 }
 0x2cd   :  { %509 = vrot.lane.b32.xlu1 %v2599_v13, %s2449_s19 }
 0x2d0   :  { %317 = vrot.lane.b32.xlu0 %v2599_v13, %s2447_s30 }
 0x2d8   :  { %513 = vrot.lane.b32.xlu0 %v2599_v13, %s2450_s20 }
 0x2e0   :  { %419 = vrot.lane.b32.xlu0 %v2601_v19, %s2451_s21 }
 0x2e8   :  { %511 = vrot.lane.b32.xlu0 %v2601_v19, %s2449_s19 }
 0x31f   :  { %v262_v32 = vpop.xlane.xlu0 %261 }
 0x320   :  { %v266_v33 = vsub.f32 %v254_v23, %v262_v32 }
 0x322   :  { %v268_v34 = vmul.f32 1.442695, %v266_v33 }
 0x324   :  { %2256 = vpow2.f32 %v268_v34 }
 0x327   :  { %v265_v35 = vpop.xlane.xlu1 %264 }
 0x328   :  { %v267_v36 = vsub.f32 %v257_v27, %v265_v35 }
 0x32a   :  { %v2257_v37 = vpop.eup %2256  ;;  %v270_v38 = vmul.f32 1.442695, %v267_v36 }
 0x32b   :  { %v272_v39 = vsel %vm259_vm15, %v2257_v37, 0.0 }
 0x32c   :  { %2258 = vpow2.f32 %v270_v38  ;;  %273 = vadd.xlane.f32.xlu2 %v272_v39 }
 0x332   :  { %v2259_v40 = vpop.eup %2258  ;;  %v2162_v41 = vpop.permute.xlu0 %2161 }
 0x333   :  { %v275_v42 = vsel %vm259_vm15, %v2259_v40, 0.0  ;;  %v2163_v43 = vunpack.i.l.bf16 %v2162_v41  ;;  %v2164_v44 = vunpack.i.h.bf16 %v2162_v41 }
 0x334   :  { %276 = vadd.xlane.f32.xlu1 %v275_v42 }
 0x335   :  { %308 = vmatpush.msra.mxu3 %v2163_v43 }
 0x337   :  { %309 = vmatpush.msra.mxu3 %v2164_v44 }
 0x339   :  { %1906 = vmatpush.xpose.msk.msrb.mxu3 %vm227_vm14, %v324_v30 }
 0x33a   :  { %v322_v45 = vpop.permute.xlu0 %321 }
 0x33d   :  { %1907 = vmatpush.xpose.msk.msrb.mxu3 %vm227_vm14, %v322_v45 }
 0x33f   :  { %v510_v49 = vpop.permute.xlu1 %509 }
 0x342   :  { %v318_v46 = vpop.permute.xlu0 %317 }
 0x344   :  { %515 = vrot.lane.b32.xlu2 %v2601_v19, %s2450_s20 }
 0x34a   :  { %v514_v47 = vpop.permute.xlu0 %513 }
 0x34c   :  { %415 = vrot.lane.b32.xlu2 %v2601_v19, %s3095_s22 }
 0x34d   :  { %417 = vrot.lane.b32.xlu1 %v2599_v13, %s2451_s21 }
 0x352   :  { %v420_v48 = vpop.permute.xlu0 %419 }
 0x353   :  { %1912 = vmatpush.xpose.msk.msrb.mxu0 %vm227_vm14, %v420_v48 }
 0x355   :  { %413 = vrot.lane.b32.xlu1 %v2599_v13, %s3095_s22 }
 0x35a   :  { %v512_v60 = vpop.permute.xlu0 %511 }
 0x39f   :  { %v274_v50 = vpop.xlane.xlu2 %273 }
 0x3a0   :  { %2260 = vrcp.f32 %v274_v50 }
 0x3a6   :  { %v2261_v51 = vpop.eup %2260 }
 0x3a7   :  { %v277_v52 = vpop.xlane.xlu1 %276  ;;  %v516_v53 = vpop.permute.xlu2 %515  ;;  %v280_v54 = vmul.f32 %v2261_v51, %v2257_v37 }
 0x3a8   :  { %2262 = vrcp.f32 %v277_v52 }
 0x3a9   :  { %1904 = vmatmul.msk.f32.vlgmr.msra.gmra.mxu3 %vm259_vm15, %v280_v54 }
 0x3aa   :  { %1918 = vmatpush.xpose.msk.msra.mxu3 %vm227_vm14, %v516_v53 }
 0x3ae   :  { %v2263_v55 = vpop.eup %2262  ;;  %1919 = vmatpush.xpose.msk.msra.mxu3 %vm227_vm14, %v514_v47 }
 0x3af   :  { %v281_v56 = vmul.f32 %v2263_v55, %v2259_v40  ;;  %v416_v59 = vpop.permute.xlu2 %415 }
 0x3b1   :  { %1905 = vmatmul.msk.f32.gmra.mxu3 %vm259_vm15, %v281_v56 }
 0x3b9   :  { %1908 = vmatmul.msk.f32.vlgmr.msrb.gmra.mxu3 %vm227_vm14, %v318_v46 }
 0x3bf   :  { %v418_v57 = vpop.permute.xlu1 %417 }
 0x3c0   :  { %1913 = vmatpush.xpose.msk.msrb.mxu0 %vm227_vm14, %v418_v57 }
 0x3c1   :  { %1909 = vmatmul.msk.f32.gmra.mxu3 %vm227_vm14, %v320_v31 }
 0x3c7   :  { %v414_v58 = vpop.permute.xlu1 %413 }
 0x3c8   :  { %1914 = vmatmul.msk.f32.vlgmr.msrb.gmra.mxu0 %vm227_vm14, %v414_v58 }
 0x3c9   :  { %1920 = vmatmul.msk.f32.vlgmr.msra.gmra.mxu3 %vm227_vm14, %v510_v49 }
 0x3d0   :  { %1915 = vmatmul.msk.f32.gmra.mxu0 %vm227_vm14, %v416_v59 }
 0x3d1   :  { %1921 = vmatmul.msk.f32.gmra.mxu3 %vm227_vm14, %v512_v60 }
 0x42c   :  { %v2673_v61 = vpop.f32.mrf.mxu3 }
 0x434   :  { %v2675_v62 = vpop.f32.mrf.mxu3 }
 0x43c   :  { %v350_v63 = vpop.f32.mrf.mxu3 }
 0x43d   :  { %v351_v1 = vadd.f32 %v350_v63, %v2620_v21 }
 0x43f   :  { %v356_v3 = vsel %vm259_vm15, %v351_v1, -inf }
 0x440   :  { %357 = vmax.xlane.f32.xlu0 %v356_v3 }
 0x444   :  { %v353_v4 = vpop.f32.mrf.mxu3 }
 0x445   :  { %v354_v5 = vadd.f32 %v353_v4, %v2627_v25  ;;  %v446_v6 = vpop.f32.mrf.mxu0 }
 0x446   :  { %v447_v7 = vadd.f32 %v446_v6, %v2620_v21 }
 0x447   :  { %v359_v8 = vsel %vm259_vm15, %v354_v5, -inf }
 0x448   :  { %360 = vmax.xlane.f32.xlu1 %v359_v8  ;;  %v452_v9 = vsel %vm259_vm15, %v447_v7, -inf }
 0x449   :  { %453 = vmax.xlane.f32.xlu0 %v452_v9 }
 0x44c   :  { %v542_v11 = vpop.f32.mrf.mxu3 }
 0x44d   :  { %v543_v12 = vadd.f32 %v542_v11, %v2620_v21  ;;  %v449_v14 = vpop.f32.mrf.mxu0 }
 0x44e   :  { %v450_v15 = vadd.f32 %v449_v14, %v2627_v25 }
 0x44f   :  { %v548_v16 = vsel %vm259_vm15, %v543_v12, -inf }
 0x450   :  { %549 = vmax.xlane.f32.xlu2 %v548_v16  ;;  %v455_v17 = vsel %vm259_vm15, %v450_v15, -inf }
 0x451   :  { %456 = vmax.xlane.f32.xlu1 %v455_v17 }
 0x454   :  { %v545_v13 = vpop.f32.mrf.mxu3 }
 0x455   :  { %v546_v19 = vadd.f32 %v545_v13, %v2627_v25 }
 0x457   :  { %v551_v18 = vsel %vm259_vm15, %v546_v19, -inf }
 0x458   :  { %552 = vmax.xlane.f32.xlu2 %v551_v18 }
 0x470   :  { %2166 = vrot.lane.b32.xlu2 %v2633_v29, %s3094_s23 }
 0x478   :  { %2176 = vrot.lane.b32.xlu2 %v2633_v29, %s3093_s24 }
 0x4b3   :  { %v358_v20 = vpop.xlane.xlu0 %357 }
 0x4b4   :  { %v362_v22 = vsub.f32 %v351_v1, %v358_v20 }
 0x4b6   :  { %v364_v23 = vmul.f32 1.442695, %v362_v22 }
 0x4b8   :  { %2264 = vpow2.f32 %v364_v23 }
 0x4bb   :  { %v361_v24 = vpop.xlane.xlu1 %360 }
 0x4bc   :  { %v363_v26 = vsub.f32 %v354_v5, %v361_v24  ;;  %v454_v27 = vpop.xlane.xlu0 %453 }
 0x4bd   :  { %v458_v31 = vsub.f32 %v447_v7, %v454_v27 }
 0x4be   :  { %v2265_v28 = vpop.eup %2264  ;;  %v366_v30 = vmul.f32 1.442695, %v363_v26 }
 0x4bf   :  { %v368_v32 = vsel %vm259_vm15, %v2265_v28, 0.0  ;;  %v460_v33 = vmul.f32 1.442695, %v458_v31 }
 0x4c0   :  { %2266 = vpow2.f32 %v366_v30  ;;  %369 = vadd.xlane.f32.xlu0 %v368_v32  ;;  %v2111_v32 = vld [vmem:[%s3073_s3 + $0x8] sm:$0xff] }
 0x4c1   :  { %2268 = vpow2.f32 %v460_v33  ;;  %662 = vmatpush.bf16.msra.mxu0 %v2111_v32  ;;  %v2110_v33 = vld [vmem:[%s3073_s3] sm:$0xff] }
 0x4c3   :  { %v550_v34 = vpop.xlane.xlu2 %549 }
 0x4c4   :  { %v554_v35 = vsub.f32 %v543_v12, %v550_v34  ;;  %v457_v39 = vpop.xlane.xlu1 %456 }
 0x4c5   :  { %v459_v44 = vsub.f32 %v450_v15, %v457_v39  ;;  %663 = vmatpush.bf16.msra.mxu0 %v2110_v33 }
 0x4c6   :  { %v2267_v36 = vpop.eup %2266  ;;  %v556_v37 = vmul.f32 1.442695, %v554_v35 }
 0x4c7   :  { %v371_v38 = vsel %vm259_vm15, %v2267_v36, 0.0  ;;  %v2269_v41 = vpop.eup %2268  ;;  %v462_v48 = vmul.f32 1.442695, %v459_v44 }
 0x4c8   :  { %2270 = vpow2.f32 %v556_v37  ;;  %372 = vadd.xlane.f32.xlu1 %v371_v38  ;;  %v464_v47 = vsel %vm259_vm15, %v2269_v41, 0.0 }
 0x4cb   :  { %v553_v40 = vpop.xlane.xlu2 %552 }
 0x4cc   :  { %v555_v42 = vsub.f32 %v546_v19, %v553_v40 }
 0x4ce   :  { %v2271_v43 = vpop.eup %2270  ;;  %v558_v45 = vmul.f32 1.442695, %v555_v42 }
 0x4cf   :  { %v560_v46 = vsel %vm259_vm15, %v2271_v43, 0.0 }
 0x4d0   :  { %2272 = vpow2.f32 %v558_v45  ;;  %561 = vadd.xlane.f32.xlu0 %v560_v46  ;;  %465 = vadd.xlane.f32.xlu1 %v464_v47 }
 0x4d1   :  { %2274 = vpow2.f32 %v462_v48 }
 0x4d3   :  { %v2167_v49 = vpop.permute.xlu2 %2166 }
 0x4d4   :  { %v2168_v50 = vunpack.i.l.bf16 %v2167_v49  ;;  %v2169_v52 = vunpack.i.h.bf16 %v2167_v49 }
 0x4d6   :  { %v2273_v51 = vpop.eup %2272  ;;  %404 = vmatpush.msra.mxu2 %v2168_v50 }
 0x4d7   :  { %v563_v53 = vsel %vm259_vm15, %v2273_v51, 0.0  ;;  %v2275_v55 = vpop.eup %2274 }
 0x4d8   :  { %405 = vmatpush.msra.mxu2 %v2169_v52  ;;  %564 = vadd.xlane.f32.xlu1 %v563_v53  ;;  %v467_v58 = vsel %vm259_vm15, %v2275_v55, 0.0 }
 0x4db   :  { %v2177_v54 = vpop.permute.xlu2 %2176 }
 0x4dc   :  { %v2178_v56 = vunpack.i.l.bf16 %v2177_v54  ;;  %v2179_v57 = vunpack.i.h.bf16 %v2177_v54 }
 0x4de   :  { %500 = vmatpush.msrb.mxu1 %v2178_v56 }
 0x4e0   :  { %501 = vmatpush.msrb.mxu1 %v2179_v57  ;;  %468 = vadd.xlane.f32.xlu1 %v467_v58 }
 0x4e4   :  { %2171 = vrot.lane.b32.xlu0 %v2633_v29, %s3088_s25 }
 0x533   :  { %v370_v59 = vpop.xlane.xlu0 %369 }
 0x534   :  { %2276 = vrcp.f32 %v370_v59 }
 0x53a   :  { %v2277_v60 = vpop.eup %2276 }
 0x53b   :  { %v373_v63 = vpop.xlane.xlu1 %372  ;;  %v376_v1 = vmul.f32 %v2277_v60, %v2265_v28 }
 0x53c   :  { %2278 = vrcp.f32 %v373_v63 }
 0x53d   :  { %1910 = vmatmul.msk.f32.vlgmr.msra.gmra.mxu2 %vm259_vm15, %v376_v1 }
 0x542   :  { %v2279_v3 = vpop.eup %2278 }
 0x543   :  { %v466_v4 = vpop.xlane.xlu1 %465  ;;  %v377_v5 = vmul.f32 %v2279_v3, %v2267_v36  ;;  %v562_v29 = vpop.xlane.xlu0 %561 }
 0x544   :  { %2280 = vrcp.f32 %v466_v4 }
 0x545   :  { %1911 = vmatmul.msk.f32.gmra.mxu2 %vm259_vm15, %v377_v5  ;;  %2282 = vrcp.f32 %v562_v29  ;;  %v2112_v29 = vld [vmem:[%s3079_s9] sm:$0xff] }
 0x54a   :  { %v2281_v6 = vpop.eup %2280 }
 0x54b   :  { %v565_v7 = vpop.xlane.xlu1 %564  ;;  %v472_v8 = vmul.f32 %v2281_v6, %v2269_v41  ;;  %v2283_v12 = vpop.eup %2282 }
 0x54c   :  { %v568_v17 = vmul.f32 %v2283_v12, %v2271_v43 }
 0x54d   :  { %1916 = vmatmul.msk.f32.vlgmr.msrb.gmra.mxu1 %vm259_vm15, %v472_v8 }
 0x553   :  { %v469_v9 = vpop.xlane.xlu1 %468 }
 0x554   :  { %2284 = vrcp.f32 %v469_v9 }
 0x555   :  { %2286 = vrcp.f32 %v565_v7  ;;  %v2113_v7 = vld [vmem:[%s3079_s9 + $0x8] sm:$0xff] }
 0x556   :  { %v2172_v11 = vpop.permute.xlu0 %2171  ;;  %796 = vmatpush.bf16.msra.mxu1 %v2113_v7  ;;  %v2117_v7 = vld [vmem:[%s3081_s11 + $0x18] sm:$0xff] }
 0x557   :  { %v2173_v14 = vunpack.i.l.bf16 %v2172_v11  ;;  %v2174_v15 = vunpack.i.h.bf16 %v2172_v11 }
 0x559   :  { %596 = vmatpush.msrb.mxu2 %v2173_v14 }
 0x55a   :  { %v2285_v16 = vpop.eup %2284  ;;  %797 = vmatpush.bf16.msra.mxu1 %v2112_v29  ;;  %v2115_v29 = vld [vmem:[%s3081_s11 + $0x8] sm:$0xff] }
 0x55b   :  { %597 = vmatpush.msrb.mxu2 %v2174_v15  ;;  %v473_v13 = vmul.f32 %v2285_v16, %v2275_v55  ;;  %v2287_v19 = vpop.eup %2286 }
 0x55c   :  { %1922 = vmatmul.msk.f32.vlgmr.msrb.gmra.mxu2 %vm259_vm15, %v568_v17  ;;  %v569_v18 = vmul.f32 %v2287_v19, %v2273_v51 }
 0x55d   :  { %1917 = vmatmul.msk.f32.gmra.mxu1 %vm259_vm15, %v473_v13 }
 0x564   :  { %1923 = vmatmul.msk.f32.gmra.mxu2 %vm259_vm15, %v569_v18 }
 0x5c0   :  { %v407_v20 = vpop.f32.mrf.mxu2 }
 0x5c8   :  { %v410_v22 = vpop.f32.mrf.mxu2 }
 0x5c9   :  { %v2180_v23 = vpack.i.bf16 %v410_v22, %v407_v20 }
 0x5ca   :  { %v503_v24 = vpop.f32.mrf.mxu1 }
 0x5cb   :  { %2181 = vrot.lane.b32.xlu0 %v2180_v23, %s3092_s26  ;;  %s3104_s26 = smov 16  }
 0x5da   :  { %v506_v26 = vpop.f32.mrf.mxu1 }
 0x5db   :  { %v2185_v27 = vpack.i.bf16 %v506_v26, %v503_v24 }
 0x5dd   :  { %2186 = vrot.lane.b32.xlu2 %v2185_v27, %s3090_s29 }
 0x5df   :  { %v599_v28 = vpop.f32.mrf.mxu2 }
 0x5e7   :  { %v602_v30 = vpop.f32.mrf.mxu2 }
 0x5e8   :  { %v2190_v31 = vpack.i.bf16 %v602_v30, %v599_v28 }
 0x5ea   :  { %2191 = vrot.lane.b32.xlu1 %v2190_v31, %s3089_s0 }
 0x637   :  { %v2187_v37 = vpop.permute.xlu2 %2186 }
 0x638   :  { %v2189_v40 = vunpack.i.h.bf16 %v2187_v37  ;;  %v2188_v41 = vunpack.i.l.bf16 %v2187_v37 }
 0x63d   :  { %v2182_v34 = vpop.permute.xlu0 %2181 }
 0x63e   :  { %v2184_v35 = vunpack.i.h.bf16 %v2182_v34  ;;  %v2183_v36 = vunpack.i.l.bf16 %v2182_v34 }
 0x640   :  { %v630_v38 = vsel %vm227_vm14, %v2675_v62, %v2184_v35  ;;  %v629_v39 = vsel %vm227_vm14, %v2673_v61, %v2183_v36  ;;  %v2232_v61 = vld [vmem:[%s3074_s4] ss:$0 sm:$0xff] }
 0x641   :  { %v631_v45 = vsel %vm259_vm15, %v629_v39, %v2188_v41  ;;  %v632_v46 = vsel %vm259_vm15, %v630_v38, %v2189_v40 }
 0x65c   :  { %v2192_v42 = vpop.permute.xlu1 %2191 }
 0x65d   :  { %v2194_v43 = vunpack.i.h.bf16 %v2192_v42  ;;  %v2193_v44 = vunpack.i.l.bf16 %v2192_v42 }
 0x65f   :  { %v635_v47 = vsel %vm633_vm1, %v632_v46, %v2194_v43  ;;  %v634_v48 = vsel %vm633_vm1, %v631_v45, %v2193_v44 }
 0x660   :  { %v636_v49 = vpack.c.bf16 %v635_v47, %v634_v48 }
 0x662   :  { %1932 = vmatmul.msk.bf16.vlgmr.msra.gmra.mxu0 %vm93_vm0, %v636_v49 }
 0x6df   :  { %v665_v62 = vpop.f32.mrf.mxu0 }
 0x6e0   :  { %v670_v50 = vadd.f32 %v665_v62, %v2558_v0 }
 0x6e2   :  { %v2729_v51 = vadd.f32 %v2232_v61, %v670_v50 }
 0x6e4   :  { %v680_v52 = vsel %vm93_vm0, %v2729_v51, 0.0 }
 0x6e5   :  { %681 = vadd.xlane.f32.xlu0 %v680_v52 }
 0x6e7   :  { %v667_v53 = vpop.f32.mrf.mxu0 }
 0x6e8   :  { %v671_v54 = vadd.f32 %v667_v53, %v2565_v2  ;;  %v2233_v53 = vld [vmem:[#allocation5] ss:$0 sm:$0xff] }
 0x6ea   :  { %v2734_v55 = vadd.f32 %v2232_v61, %v671_v54 }
 0x6ec   :  { %v683_v56 = vsel %vm93_vm0, %v2734_v55, 0.0 }
 0x6ed   :  { %684 = vadd.xlane.f32.xlu2 %v683_v56 }
 0x758   :  { %v682_v57 = vpop.xlane.xlu0 %681 }
 0x759   :  { %v686_v58 = vmul.f32 %v682_v57, %v2569_v10 }
 0x75b   :  { %v2740_v0 = vsub.f32 %v2729_v51, %v686_v58 }
 0x75d   :  { %v690_v59 = vmul.f32 %v2740_v0, %v2740_v0 }
 0x75f   :  { %v692_v60 = vsel %vm93_vm0, %v690_v59, 0.0 }
 0x760   :  { %693 = vadd.xlane.f32.xlu1 %v692_v60  ;;  %v685_v63 = vpop.xlane.xlu2 %684  ;;  %v2234_v60 = vld [vmem:[%s3078_s8] ss:$0 sm:$0xff] }
 0x761   :  { %v687_v2 = vmul.f32 %v685_v63, %v2569_v10 }
 0x763   :  { %v2747_v1 = vsub.f32 %v2734_v55, %v687_v2 }
 0x765   :  { %v691_v3 = vmul.f32 %v2747_v1, %v2747_v1 }
 0x767   :  { %v695_v4 = vsel %vm93_vm0, %v691_v3, 0.0 }
 0x768   :  { %696 = vadd.xlane.f32.xlu2 %v695_v4 }
 0x7d3   :  { %v694_v5 = vpop.xlane.xlu1 %693 }
 0x7d4   :  { %v698_v6 = vmul.f32 %v694_v5, %v2569_v10  ;;  %v2119_v5 = vld [vmem:[%s3081_s11 + $0x28] sm:$0xff] }
 0x7d6   :  { %v700_v8 = vadd.f32 1e-05, %v698_v6  ;;  %v2118_v6 = vld [vmem:[%s3081_s11 + $0x20] sm:$0xff] }
 0x7d8   :  { %2288 = vrsqrt.f32 %v700_v8  ;;  %vm709_vm2 = vcmp.eq.f32.partialorder %v700_v8, inf  ;;  %v712_v24 = vand.u32 2147483648, %v700_v8  ;;  %vm711_vm3 = vcmp.eq.f32.partialorder %v700_v8, 0.0 }
 0x7db   :  { %v697_v9 = vpop.xlane.xlu2 %696 }
 0x7dc   :  { %v699_v11 = vmul.f32 %v697_v9, %v2569_v10  ;;  %v2114_v9 = vld [vmem:[%s3081_s11] sm:$0xff] }
 0x7de   :  { %v2289_v12 = vpop.eup %2288  ;;  %v701_v14 = vadd.f32 1e-05, %v699_v11  ;;  %v2235_v11 = vld [vmem:[%s3080_s10] ss:$0 sm:$0xff] }
 0x7df   :  { %v703_v15 = vmul.f32 %v2289_v12, %v700_v8 }
 0x7e0   :  { %2290 = vrsqrt.f32 %v701_v14  ;;  %vm721_vm4 = vcmp.eq.f32.partialorder %v701_v14, inf  ;;  %v724_v33 = vand.u32 2147483648, %v701_v14  ;;  %vm723_vm5 = vcmp.eq.f32.partialorder %v701_v14, 0.0 }
 0x7e1   :  { %v704_v16 = vmul.f32 %v2289_v12, %v703_v15 }
 0x7e3   :  { %v705_v17 = vmul.f32 0.5, %v704_v16 }
 0x7e5   :  { %v706_v13 = vsub.f32 1.5, %v705_v17 }
 0x7e6   :  { %v2291_v19 = vpop.eup %2290 }
 0x7e7   :  { %v707_v18 = vmul.f32 %v2289_v12, %v706_v13  ;;  %v715_v20 = vmul.f32 %v2291_v19, %v701_v14 }
 0x7e9   :  { %v708_v22 = vmul.f32 %v707_v18, %v700_v8  ;;  %v716_v23 = vmul.f32 %v2291_v19, %v715_v20 }
 0x7eb   :  { %v710_v26 = vsel %vm709_vm2, %v700_v8, %v708_v22  ;;  %v717_v27 = vmul.f32 0.5, %v716_v23  ;;  %v2116_v8 = vld [vmem:[%s3081_s11 + $0x10] sm:$0xff] }
 0x7ec   :  { %v713_v28 = vsel %vm711_vm3, %v712_v24, %v710_v26 }
 0x7ed   :  { %2292 = vrcp.f32 %v713_v28  ;;  %v718_v30 = vsub.f32 1.5, %v717_v27  ;;  %v737_v40 = vand.u32 2147483648, %v713_v28  ;;  %vm731_vm7 = vweird.f32 %v713_v28 }
 0x7ee   :  { %v735_v42 = vand.u32 2147483647, %v713_v28 }
 0x7ef   :  { %v719_v31 = vmul.f32 %v2291_v19, %v718_v30  ;;  %v738_v46 = vor.u32 1.1754944e-38, %v737_v40 }
 0x7f0   :  { %vm736_vm9 = vcmp.eq.f32.partialorder %v735_v42, 8.507059e+37 }
 0x7f1   :  { %v720_v32 = vmul.f32 %v719_v31, %v701_v14 }
 0x7f3   :  { %v2293_v34 = vpop.eup %2292  ;;  %v722_v35 = vsel %vm721_vm4, %v701_v14, %v720_v32 }
 0x7f4   :  { %v725_v36 = vsel %vm723_vm5, %v724_v33, %v722_v35  ;;  %v727_v37 = vmul.f32 %v2293_v34, %v713_v28  ;;  %vm732_vm6 = vweird.f32 %v2293_v34 }
 0x7f5   :  { %2294 = vrcp.f32 %v725_v36  ;;  %vm733_vm8 = vmor %vm731_vm7, %vm732_vm6  ;;  %v752_v49 = vand.u32 2147483648, %v725_v36  ;;  %v750_v62 = vand.u32 2147483647, %v725_v36  ;;  %vm746_vm11 = vweird.f32 %v725_v36 }
 0x7f6   :  { %v728_v38 = vsub.f32 1.0, %v727_v37 }
 0x7f7   :  { %v753_v54 = vor.u32 1.1754944e-38, %v752_v49  ;;  %vm751_vm13 = vcmp.eq.f32.partialorder %v750_v62, 8.507059e+37 }
 0x7f8   :  { %v729_v39 = vmul.f32 %v2293_v34, %v728_v38  ;;  %v2236_v38 = vld [vmem:[%s3082_s12] ss:$0 sm:$0xff] }
 0x7fa   :  { %v730_v41 = vadd.f32 %v2293_v34, %v729_v39 }
 0x7fb   :  { %v2295_v43 = vpop.eup %2294 }
 0x7fc   :  { %v734_v44 = vsel %vm733_vm8, %v2293_v34, %v730_v41  ;;  %v742_v45 = vmul.f32 %v2295_v43, %v725_v36  ;;  %vm747_vm10 = vweird.f32 %v2295_v43 }
 0x7fd   :  { %v739_v48 = vsel %vm736_vm9, %v738_v46, %v734_v44  ;;  %vm748_vm12 = vmor %vm746_vm11, %vm747_vm10 }
 0x7fe   :  { %v743_v47 = vsub.f32 1.0, %v742_v45  ;;  %v740_v50 = vmul.f32 %v739_v48, %v2740_v0  ;;  %v2121_v0 = vld [vmem:[%s3081_s11 + $0x38] sm:$0xff] }
 0x7ff   :  { %891 = vmatpush.bf16.msrb.mxu3 %v2121_v0 }
 0x800   :  { %v744_v61 = vmul.f32 %v2295_v43, %v743_v47  ;;  %v759_v59 = vmul.f32 %v2233_v53, %v740_v50 }
 0x802   :  { %v745_v52 = vadd.f32 %v2295_v43, %v744_v61  ;;  %v764_v2 = vadd.f32 %v2234_v60, %v759_v59  ;;  %v2122_v59 = vld [vmem:[%s3072_s2 + $0x10] sm:$0xff] }
 0x804   :  { %v749_v56 = vsel %vm748_vm12, %v2295_v43, %v745_v52 }
 0x805   :  { %v754_v57 = vsel %vm751_vm13, %v753_v54, %v749_v56 }
 0x806   :  { %v755_v58 = vmul.f32 %v754_v57, %v2747_v1  ;;  %v2120_v1 = vld [vmem:[%s3081_s11 + $0x30] sm:$0xff]  ;;  %v2123_v57 = vld [vmem:[%s3072_s2 + $0x18] sm:$0xff] }
 0x807   :  { %892 = vmatpush.bf16.msrb.mxu3 %v2120_v1  ;;  %1024 = vmatpush.bf16.msra.mxu2 %v2123_v57 }
 0x808   :  { %v760_v63 = vmul.f32 %v2233_v53, %v755_v58 }
 0x80a   :  { %v765_v3 = vadd.f32 %v2234_v60, %v760_v63 }
 0x80b   :  { %893 = vmatpush.bf16.msrb.mxu3 %v2119_v5  ;;  %1025 = vmatpush.bf16.msra.mxu2 %v2122_v59 }
 0x80c   :  { %v766_v4 = vpack.c.bf16 %v765_v3, %v764_v2 }
 0x80e   :  { %1941 = vmatmul.msk.bf16.vlgmr.msra.gmra.mxu1 %vm93_vm0, %v766_v4 }
 0x80f   :  { %894 = vmatpush.bf16.msrb.mxu3 %v2118_v6 }
 0x813   :  { %895 = vmatpush.bf16.msrb.mxu3 %v2117_v7 }
 0x817   :  { %896 = vmatpush.bf16.msrb.mxu3 %v2116_v8 }
 0x81b   :  { %897 = vmatpush.bf16.msrb.mxu3 %v2115_v29 }
 0x81f   :  { %898 = vmatpush.bf16.msrb.mxu3 %v2114_v9 }
 0x88b   :  { %v799_v12 = vpop.f32.mrf.mxu1 }
 0x88c   :  { %v800_v14 = vadd.f32 %v2235_v11, %v799_v12 }
 0x88e   :  { %v806_v15 = vmul.f32 %v800_v14, %v800_v14  ;;  %v804_v32 = vmul.f32 0.5, %v800_v14 }
 0x890   :  { %v808_v16 = vmul.f32 %v806_v15, %v800_v14 }
 0x892   :  { %v810_v17 = vmul.f32 0.044715, %v808_v16 }
 0x893   :  { %v801_v13 = vpop.f32.mrf.mxu1 }
 0x894   :  { %v812_v19 = vadd.f32 %v810_v17, %v800_v14  ;;  %v802_v18 = vadd.f32 %v2235_v11, %v801_v13 }
 0x896   :  { %v807_v20 = vmul.f32 %v802_v18, %v802_v18  ;;  %v814_v22 = vmul.f32 0.7978846, %v812_v19  ;;  %v805_v33 = vmul.f32 0.5, %v802_v18 }
 0x898   :  { %v809_v23 = vmul.f32 %v807_v20, %v802_v18  ;;  %2296 = vtanh.f32 %v814_v22 }
 0x89a   :  { %v811_v24 = vmul.f32 0.044715, %v809_v23 }
 0x89c   :  { %v813_v26 = vadd.f32 %v811_v24, %v802_v18 }
 0x89e   :  { %v815_v27 = vmul.f32 0.7978846, %v813_v26  ;;  %v2297_v28 = vpop.eup %2296 }
 0x89f   :  { %v818_v30 = vadd.f32 1.0, %v2297_v28 }
 0x8a0   :  { %2298 = vtanh.f32 %v815_v27 }
 0x8a1   :  { %v820_v35 = vmul.f32 %v818_v30, %v804_v32 }
 0x8a6   :  { %v2299_v31 = vpop.eup %2298 }
 0x8a7   :  { %v819_v34 = vadd.f32 1.0, %v2299_v31 }
 0x8a9   :  { %v821_v36 = vmul.f32 %v819_v34, %v805_v33 }
 0x8ab   :  { %v822_v37 = vpack.c.bf16 %v821_v36, %v820_v35 }
 0x8ad   :  { %899 = vmatmul.bf16.vlgmr.msrb.gmra.mxu3 %v822_v37 }
 0x930   :  { %v900_v39 = vpop.f32.mrf.mxu3 }
 0x931   :  { %v901_v40 = vadd.f32 %v2236_v38, %v900_v39 }
 0x933   :  { %v2797_v41 = vadd.f32 %v901_v40, %v2729_v51 }
 0x935   :  { %v911_v42 = vsel %vm93_vm0, %v2797_v41, 0.0 }
 0x936   :  { %912 = vadd.xlane.f32.xlu0 %v911_v42 }
 0x938   :  { %v902_v43 = vpop.f32.mrf.mxu3 }
 0x939   :  { %v903_v44 = vadd.f32 %v2236_v38, %v902_v43  ;;  %v2237_v43 = vld [vmem:[#allocation2 + $0x1] ss:$0 sm:$0xff] }
 0x93b   :  { %v2802_v45 = vadd.f32 %v903_v44, %v2734_v55 }
 0x93d   :  { %v914_v46 = vsel %vm93_vm0, %v2802_v45, 0.0 }
 0x93e   :  { %915 = vadd.xlane.f32.xlu2 %v914_v46 }
 0x9a9   :  { %v913_v47 = vpop.xlane.xlu0 %912 }
 0x9aa   :  { %v917_v48 = vmul.f32 %v913_v47, %v2569_v10 }
 0x9ac   :  { %v2808_v49 = vsub.f32 %v2797_v41, %v917_v48 }
 0x9ae   :  { %v921_v51 = vmul.f32 %v2808_v49, %v2808_v49 }
 0x9b0   :  { %v923_v61 = vsel %vm93_vm0, %v921_v51, 0.0 }
 0x9b1   :  { %v916_v62 = vpop.xlane.xlu2 %915  ;;  %924 = vadd.xlane.f32.xlu0 %v923_v61  ;;  %v2238_v61 = vld [vmem:[%s3076_s6 + $0x1] ss:$0 sm:$0xff]  ;;  %s3099_s6 = smov 112  }
 0x9b2   :  { %v918_v55 = vmul.f32 %v916_v62, %v2569_v10 }
 0x9b4   :  { %v2815_v50 = vsub.f32 %v2802_v45, %v918_v55 }
 0x9b6   :  { %v922_v52 = vmul.f32 %v2815_v50, %v2815_v50 }
 0x9b8   :  { %v926_v53 = vsel %vm93_vm0, %v922_v52, 0.0 }
 0x9b9   :  { %927 = vadd.xlane.f32.xlu2 %v926_v53 }
 0xa24   :  { %v925_v54 = vpop.xlane.xlu0 %924 }
 0xa25   :  { %v929_v56 = vmul.f32 %v925_v54, %v2569_v10 }
 0xa27   :  { %v931_v58 = vadd.f32 1e-05, %v929_v56 }
 0xa29   :  { %2300 = vrsqrt.f32 %v931_v58  ;;  %vm940_vm2 = vcmp.eq.f32.partialorder %v931_v58, inf  ;;  %v943_v11 = vand.u32 2147483648, %v931_v58  ;;  %vm942_vm3 = vcmp.eq.f32.partialorder %v931_v58, 0.0 }
 0xa2c   :  { %v928_v60 = vpop.xlane.xlu2 %927 }
 0xa2d   :  { %v930_v63 = vmul.f32 %v928_v60, %v2569_v10 }
 0xa2f   :  { %v2301_v2 = vpop.eup %2300  ;;  %v932_v3 = vadd.f32 1e-05, %v930_v63 }
 0xa30   :  { %v934_v4 = vmul.f32 %v2301_v2, %v931_v58 }
 0xa31   :  { %2302 = vrsqrt.f32 %v932_v3  ;;  %vm952_vm4 = vcmp.eq.f32.partialorder %v932_v3, inf  ;;  %v955_v19 = vand.u32 2147483648, %v932_v3  ;;  %vm954_vm5 = vcmp.eq.f32.partialorder %v932_v3, 0.0 }
 0xa32   :  { %v935_v0 = vmul.f32 %v2301_v2, %v934_v4 }
 0xa34   :  { %v936_v1 = vmul.f32 0.5, %v935_v0 }
 0xa36   :  { %v937_v5 = vsub.f32 1.5, %v936_v1 }
 0xa37   :  { %v2303_v6 = vpop.eup %2302 }
 0xa38   :  { %v938_v7 = vmul.f32 %v2301_v2, %v937_v5  ;;  %v946_v8 = vmul.f32 %v2303_v6, %v932_v3 }
 0xa3a   :  { %v939_v29 = vmul.f32 %v938_v7, %v931_v58  ;;  %v947_v9 = vmul.f32 %v2303_v6, %v946_v8 }
 0xa3c   :  { %v941_v12 = vsel %vm940_vm2, %v931_v58, %v939_v29  ;;  %v948_v14 = vmul.f32 0.5, %v947_v9 }
 0xa3d   :  { %v944_v15 = vsel %vm942_vm3, %v943_v11, %v941_v12 }
 0xa3e   :  { %2304 = vrcp.f32 %v944_v15  ;;  %v949_v16 = vsub.f32 1.5, %v948_v14  ;;  %v968_v27 = vand.u32 2147483648, %v944_v15  ;;  %vm962_vm7 = vweird.f32 %v944_v15 }
 0xa3f   :  { %v966_v30 = vand.u32 2147483647, %v944_v15 }
 0xa40   :  { %v950_v17 = vmul.f32 %v2303_v6, %v949_v16  ;;  %v969_v34 = vor.u32 1.1754944e-38, %v968_v27 }
 0xa41   :  { %vm967_vm9 = vcmp.eq.f32.partialorder %v966_v30, 8.507059e+37 }
 0xa42   :  { %v951_v13 = vmul.f32 %v950_v17, %v932_v3 }
 0xa44   :  { %v2305_v18 = vpop.eup %2304  ;;  %v953_v20 = vsel %vm952_vm4, %v932_v3, %v951_v13 }
 0xa45   :  { %v956_v22 = vsel %vm954_vm5, %v955_v19, %v953_v20  ;;  %v958_v23 = vmul.f32 %v2305_v18, %v944_v15  ;;  %vm963_vm6 = vweird.f32 %v2305_v18 }
 0xa46   :  { %2306 = vrcp.f32 %v956_v22  ;;  %vm964_vm8 = vmor %vm962_vm7, %vm963_vm6  ;;  %v983_v37 = vand.u32 2147483648, %v956_v22  ;;  %v981_v39 = vand.u32 2147483647, %v956_v22  ;;  %vm977_vm11 = vweird.f32 %v956_v22 }
 0xa47   :  { %v959_v24 = vsub.f32 1.0, %v958_v23 }
 0xa48   :  { %v984_v44 = vor.u32 1.1754944e-38, %v983_v37  ;;  %vm982_vm13 = vcmp.eq.f32.partialorder %v981_v39, 8.507059e+37 }
 0xa49   :  { %v960_v26 = vmul.f32 %v2305_v18, %v959_v24 }
 0xa4b   :  { %v961_v28 = vadd.f32 %v2305_v18, %v960_v26 }
 0xa4c   :  { %v2307_v31 = vpop.eup %2306 }
 0xa4d   :  { %v965_v32 = vsel %vm964_vm8, %v2305_v18, %v961_v28  ;;  %v973_v33 = vmul.f32 %v2307_v31, %v956_v22  ;;  %vm978_vm10 = vweird.f32 %v2307_v31 }
 0xa4e   :  { %v970_v36 = vsel %vm967_vm9, %v969_v34, %v965_v32  ;;  %vm979_vm12 = vmor %vm977_vm11, %vm978_vm10  ;;  %v2360_v32 = vld [vmem:[%s3071_s1] sm:$0xff] }
 0xa4f   :  { %v974_v35 = vsub.f32 1.0, %v973_v33  ;;  %v971_v40 = vmul.f32 %v970_v36, %v2808_v49  ;;  %v2361_v36 = vld [vmem:[%s3071_s1 + $0x8] sm:$0xff]  ;;  %s3100_s1 = smov 56  }
 0xa51   :  { %v975_v38 = vmul.f32 %v2307_v31, %v974_v35  ;;  %v990_v51 = vmul.f32 %v2237_v43, %v971_v40 }
 0xa53   :  { %v976_v42 = vadd.f32 %v2307_v31, %v975_v38  ;;  %v995_v55 = vadd.f32 %v2238_v61, %v990_v51 }
 0xa55   :  { %v980_v46 = vsel %vm979_vm12, %v2307_v31, %v976_v42 }
 0xa56   :  { %v985_v47 = vsel %vm982_vm13, %v984_v44, %v980_v46 }
 0xa57   :  { %v986_v48 = vmul.f32 %v985_v47, %v2815_v50 }
 0xa59   :  { %v991_v62 = vmul.f32 %v2237_v43, %v986_v48 }
 0xa5b   :  { %v996_v52 = vadd.f32 %v2238_v61, %v991_v62 }
 0xa5d   :  { %v997_v53 = vpack.c.bf16 %v996_v52, %v995_v55 }
 0xa5f   :  { %1987 = vmatmul.msk.bf16.vlgmr.msra.gmra.mxu2 %vm93_vm0, %v997_v53 }
 0xae2   :  { %v2834_v49 = vpop.f32.mrf.mxu2 }
 0xae3   :  { %1130 = vrot.lane.b32.xlu2 %v2834_v49, %s2445_s27  ;;  %1034 = vrot.lane.b32.xlu1 %v2834_v49, %s2446_s28 }
 0xaea   :  { %v1029_v50 = vpop.f32.mrf.mxu2 }
 0xaeb   :  { %1132 = vrot.lane.b32.xlu2 %v1029_v50, %s2445_s27  ;;  %1036 = vrot.lane.b32.xlu0 %v1029_v50, %s2446_s28  ;;  %v2843_v54 = vpack.i.bf16 %v2834_v49, %v1029_v50 }
 0xaed   :  { %2196 = vrot.lane.b32.xlu1 %v2843_v54, %s2448_s7 }
 0xaf3   :  { %1128 = vrot.lane.b32.xlu0 %v1029_v50, %s2447_s30 }
 0xb3d   :  { %v1131_v56 = vpop.permute.xlu2 %1130 }
 0xb45   :  { %v1133_v57 = vpop.permute.xlu2 %1132 }
 0xb46   :  { %1994 = vmatpush.xpose.msk.msrb.mxu2 %vm227_vm14, %v1133_v57 }
 0xb4a   :  { %1995 = vmatpush.xpose.msk.msrb.mxu2 %vm227_vm14, %v1131_v56 }
 0xb55   :  { %v1035_v58 = vpop.permute.xlu1 %1034 }
 0xb5d   :  { %v1037_v59 = vpop.permute.xlu0 %1036 }
 0xb5e   :  { %1988 = vmatpush.xpose.msk.msrb.mxu0 %vm227_vm14, %v1037_v59 }
 0xb5f   :  { %v2197_v60 = vpop.permute.xlu1 %2196 }
 0xb60   :  { %v2198_v63 = vunpack.i.l.bf16 %v2197_v60  ;;  %v2199_v2 = vunpack.i.h.bf16 %v2197_v60 }
 0xb62   :  { %1989 = vmatpush.xpose.msk.msrb.mxu0 %vm227_vm14, %v1035_v58  ;;  %1117 = vmatpush.msrb.mxu1 %v2198_v63 }
 0xb64   :  { %1118 = vmatpush.msrb.mxu1 %v2199_v2 }
 0xb65   :  { %1990 = vmatmul.msk.f32.vlgmr.msrb.gmra.mxu0 %vm227_vm14, %v2834_v49  ;;  %v1129_v17 = vpop.permute.xlu0 %1128 }
 0xb6d   :  { %1991 = vmatmul.msk.f32.gmra.mxu0 %vm227_vm14, %v1029_v50 }
 0xbe2   :  { %v1063_v3 = vpop.f32.mrf.mxu0 }
 0xbe3   :  { %v1064_v4 = vadd.f32 %v1063_v3, %v2620_v21 }
 0xbe5   :  { %v1069_v0 = vsel %vm259_vm15, %v1064_v4, -inf }
 0xbe6   :  { %1070 = vmax.xlane.f32.xlu2 %v1069_v0 }
 0xbea   :  { %v1066_v1 = vpop.f32.mrf.mxu0 }
 0xbeb   :  { %v1067_v5 = vadd.f32 %v1066_v1, %v2627_v25 }
 0xbed   :  { %v1072_v6 = vsel %vm259_vm15, %v1067_v5, -inf }
 0xbee   :  { %1073 = vmax.xlane.f32.xlu2 %v1072_v6 }
 0xc06   :  { %1126 = vrot.lane.b32.xlu2 %v2834_v49, %s2447_s30 }
 0xc0e   :  { %1228 = vrot.lane.b32.xlu2 %v1029_v50, %s2451_s21 }
 0xc16   :  { %1324 = vrot.lane.b32.xlu2 %v1029_v50, %s2450_s20 }
 0xc1e   :  { %1322 = vrot.lane.b32.xlu2 %v2834_v49, %s2450_s20  ;;  %s3102_s20 = smov 40  }
 0xc26   :  { %1318 = vrot.lane.b32.xlu2 %v2834_v49, %s2449_s19 }
 0xc2e   :  { %1320 = vrot.lane.b32.xlu2 %v1029_v50, %s2449_s19  ;;  %s3101_s19 = smov 48  }
 0xc59   :  { %v1071_v21 = vpop.xlane.xlu2 %1070 }
 0xc5a   :  { %v1075_v25 = vsub.f32 %v1064_v4, %v1071_v21 }
 0xc5c   :  { %v1077_v7 = vmul.f32 1.442695, %v1075_v25 }
 0xc5e   :  { %2308 = vpow2.f32 %v1077_v7 }
 0xc61   :  { %v1074_v8 = vpop.xlane.xlu2 %1073 }
 0xc62   :  { %v1076_v29 = vsub.f32 %v1067_v5, %v1074_v8 }
 0xc64   :  { %v2309_v9 = vpop.eup %2308  ;;  %v1079_v11 = vmul.f32 1.442695, %v1076_v29 }
 0xc65   :  { %v1081_v12 = vsel %vm259_vm15, %v2309_v9, 0.0 }
 0xc66   :  { %2310 = vpow2.f32 %v1079_v11  ;;  %1082 = vadd.xlane.f32.xlu0 %v1081_v12 }
 0xc69   :  { %v1127_v14 = vpop.permute.xlu2 %1126 }
 0xc6a   :  { %1996 = vmatmul.msk.f32.vlgmr.msrb.gmra.mxu2 %vm227_vm14, %v1127_v14 }
 0xc6c   :  { %v2311_v15 = vpop.eup %2310 }
 0xc6d   :  { %v1084_v16 = vsel %vm259_vm15, %v2311_v15, 0.0 }
 0xc6e   :  { %1085 = vadd.xlane.f32.xlu1 %v1084_v16 }
 0xc71   :  { %v1229_v13 = vpop.permute.xlu2 %1228 }
 0xc72   :  { %1997 = vmatmul.msk.f32.gmra.mxu2 %vm227_vm14, %v1129_v17  ;;  %2000 = vmatpush.xpose.msk.msra.mxu1 %vm227_vm14, %v1229_v13 }
 0xc79   :  { %v1325_v19 = vpop.permute.xlu2 %1324 }
 0xc7a   :  { %1222 = vrot.lane.b32.xlu0 %v2834_v49, %s3099_s6  ;;  %2006 = vmatpush.xpose.msk.msra.mxu2 %vm227_vm14, %v1325_v19 }
 0xc81   :  { %v1323_v18 = vpop.permute.xlu2 %1322 }
 0xc82   :  { %1224 = vrot.lane.b32.xlu0 %v1029_v50, %s3099_s6  ;;  %2007 = vmatpush.xpose.msk.msra.mxu2 %vm227_vm14, %v1323_v18 }
 0xc87   :  { %1226 = vrot.lane.b32.xlu1 %v2834_v49, %s2451_s21  ;;  %s3103_s21 = smov 8  }
 0xc89   :  { %v1319_v20 = vpop.permute.xlu2 %1318 }
 0xc8a   :  { %2008 = vmatmul.msk.f32.vlgmr.msra.gmra.mxu2 %vm227_vm14, %v1319_v20 }
 0xc91   :  { %v1321_v22 = vpop.permute.xlu2 %1320 }
 0xc92   :  { %2009 = vmatmul.msk.f32.gmra.mxu2 %vm227_vm14, %v1321_v22 }
 0xcd9   :  { %v1083_v23 = vpop.xlane.xlu0 %1082 }
 0xcda   :  { %2312 = vrcp.f32 %v1083_v23 }
 0xce0   :  { %v2313_v24 = vpop.eup %2312 }
 0xce1   :  { %v1089_v26 = vmul.f32 %v2313_v24, %v2309_v9  ;;  %v1086_v27 = vpop.xlane.xlu1 %1085 }
 0xce2   :  { %2314 = vrcp.f32 %v1086_v27 }
 0xce3   :  { %1992 = vmatmul.msk.f32.vlgmr.msrb.gmra.mxu1 %vm259_vm15, %v1089_v26 }
 0xce8   :  { %v2315_v28 = vpop.eup %2314 }
 0xce9   :  { %v1090_v30 = vmul.f32 %v2315_v28, %v2311_v15 }
 0xceb   :  { %1993 = vmatmul.msk.f32.gmra.mxu1 %vm259_vm15, %v1090_v30 }
 0xcec   :  { %v1223_v40 = vpop.permute.xlu0 %1222 }
 0xced   :  { %v1159_v31 = vpop.f32.mrf.mxu2 }
 0xcee   :  { %v1160_v33 = vadd.f32 %v2360_v32, %v1159_v31 }
 0xcf0   :  { %v1165_v34 = vsel %vm259_vm15, %v1160_v33, -inf }
 0xcf1   :  { %1166 = vmax.xlane.f32.xlu0 %v1165_v34 }
 0xcf4   :  { %v1225_v42 = vpop.permute.xlu0 %1224 }
 0xcf5   :  { %v1162_v35 = vpop.f32.mrf.mxu2 }
 0xcf6   :  { %v1163_v37 = vadd.f32 %v2361_v36, %v1162_v35 }
 0xcf8   :  { %v1168_v38 = vsel %vm259_vm15, %v1163_v37, -inf }
 0xcf9   :  { %v1227_v39 = vpop.permute.xlu1 %1226  ;;  %1169 = vmax.xlane.f32.xlu1 %v1168_v38 }
 0xcfa   :  { %2001 = vmatpush.xpose.msk.msra.mxu1 %vm227_vm14, %v1227_v39 }
 0xcfd   :  { %2002 = vmatmul.msk.f32.vlgmr.msra.gmra.mxu1 %vm227_vm14, %v1223_v40 }
 0xd05   :  { %2003 = vmatmul.msk.f32.gmra.mxu1 %vm227_vm14, %v1225_v42 }
 0xd0d   :  { %v1351_v43 = vpop.f32.mrf.mxu2 }
 0xd0e   :  { %v1352_v44 = vadd.f32 %v2360_v32, %v1351_v43 }
 0xd10   :  { %v1357_v46 = vsel %vm259_vm15, %v1352_v44, -inf }
 0xd11   :  { %1358 = vmax.xlane.f32.xlu0 %v1357_v46 }
 0xd15   :  { %v1354_v58 = vpop.f32.mrf.mxu2 }
 0xd16   :  { %v1355_v60 = vadd.f32 %v2361_v36, %v1354_v58 }
 0xd18   :  { %v1360_v0 = vsel %vm259_vm15, %v1355_v60, -inf }
 0xd60   :  { %v2896_v61 = vpop.f32.mrf.mxu1 }
 0xd64   :  { %v1167_v47 = vpop.xlane.xlu0 %1166 }
 0xd65   :  { %v1171_v48 = vsub.f32 %v1160_v33, %v1167_v47 }
 0xd67   :  { %v1173_v51 = vmul.f32 1.442695, %v1171_v48 }
 0xd68   :  { %v2902_v52 = vpop.f32.mrf.mxu1 }
 0xd69   :  { %2316 = vpow2.f32 %v1173_v51 }
 0xd6c   :  { %v1170_v53 = vpop.xlane.xlu1 %1169 }
 0xd6d   :  { %v1172_v56 = vsub.f32 %v1163_v37, %v1170_v53 }
 0xd6f   :  { %v2898_v62 = vpop.eup %2316  ;;  %v1175_v59 = vmul.f32 1.442695, %v1172_v56 }
 0xd70   :  { %v1177_v55 = vsel %vm259_vm15, %v2898_v62, 0.0 }
 0xd71   :  { %1178 = vadd.xlane.f32.xlu0 %v1177_v55  ;;  %2318 = vpow2.f32 %v1175_v59 }
 0xd77   :  { %v2319_v6 = vpop.eup %2318 }
 0xd78   :  { %v1180_v21 = vsel %vm259_vm15, %v2319_v6, 0.0 }
 0xd7a   :  { %v1255_v49 = vpop.f32.mrf.mxu1 }
 0xd7b   :  { %v1256_v50 = vadd.f32 %v2360_v32, %v1255_v49 }
 0xd7d   :  { %v1261_v57 = vsel %vm259_vm15, %v1256_v50, -inf }
 0xd7e   :  { %1262 = vmax.xlane.f32.xlu2 %v1261_v57 }
 0xd82   :  { %v1258_v63 = vpop.f32.mrf.mxu1 }
 0xd83   :  { %v1259_v2 = vadd.f32 %v2361_v36, %v1258_v63 }
 0xd84   :  { %v1359_v3 = vpop.xlane.xlu0 %1358 }
 0xd85   :  { %v1363_v4 = vsub.f32 %v1352_v44, %v1359_v3  ;;  %v1264_v1 = vsel %vm259_vm15, %v1259_v2, -inf }
 0xd86   :  { %1361 = vmax.xlane.f32.xlu2 %v1360_v0  ;;  %1265 = vmax.xlane.f32.xlu1 %v1264_v1  ;;  %v2124_v0 = vld [vmem:[%s3073_s3 + $0x10] sm:$0xff] }
 0xd87   :  { %v1365_v5 = vmul.f32 1.442695, %v1363_v4  ;;  %v2125_v4 = vld [vmem:[%s3073_s3 + $0x18] sm:$0xff] }
 0xd88   :  { %1471 = vmatpush.bf16.msrb.mxu1 %v2125_v4 }
 0xd89   :  { %2320 = vpow2.f32 %v1365_v5 }
 0xd8c   :  { %1472 = vmatpush.bf16.msrb.mxu1 %v2124_v0 }
 0xd8e   :  { %1181 = vadd.xlane.f32.xlu2 %v1180_v21 }
 0xd8f   :  { %v2321_v25 = vpop.eup %2320 }
 0xd90   :  { %v1369_v7 = vsel %vm259_vm15, %v2321_v25, 0.0 }
 0xd91   :  { %1370 = vadd.xlane.f32.xlu0 %v1369_v7 }
 0xd9f   :  { %2201 = vrot.lane.b32.xlu1 %v2843_v54, %s3100_s1 }
 0xda6   :  { %2206 = vrot.lane.b32.xlu2 %v2843_v54, %s3101_s19 }
 0xda7   :  { %2211 = vrot.lane.b32.xlu1 %v2843_v54, %s3102_s20 }
 0xde4   :  { %v1179_v22 = vpop.xlane.xlu0 %1178 }
 0xdf1   :  { %v1263_v8 = vpop.xlane.xlu2 %1262 }
 0xdf2   :  { %v1267_v29 = vsub.f32 %v1256_v50, %v1263_v8 }
 0xdf4   :  { %v1269_v9 = vmul.f32 1.442695, %v1267_v29 }
 0xdf6   :  { %2322 = vpow2.f32 %v1269_v9 }
 0xdf9   :  { %v1362_v11 = vpop.xlane.xlu2 %1361  ;;  %v1266_v12 = vpop.xlane.xlu1 %1265 }
 0xdfa   :  { %v1268_v14 = vsub.f32 %v1259_v2, %v1266_v12  ;;  %v1364_v17 = vsub.f32 %v1355_v60, %v1362_v11 }
 0xdfc   :  { %v2323_v15 = vpop.eup %2322  ;;  %v1271_v16 = vmul.f32 1.442695, %v1268_v14  ;;  %v1367_v19 = vmul.f32 1.442695, %v1364_v17 }
 0xdfd   :  { %v1273_v13 = vsel %vm259_vm15, %v2323_v15, 0.0 }
 0xdfe   :  { %1274 = vadd.xlane.f32.xlu0 %v1273_v13  ;;  %2324 = vpow2.f32 %v1271_v16 }
 0xdff   :  { %2326 = vpow2.f32 %v1367_v19 }
 0xe00   :  { %2328 = vrcp.f32 %v1179_v22 }
 0xe01   :  { %v1182_v18 = vpop.xlane.xlu2 %1181 }
 0xe02   :  { %2330 = vrcp.f32 %v1182_v18 }
 0xe04   :  { %v2325_v20 = vpop.eup %2324  ;;  %v1371_v35 = vpop.xlane.xlu0 %1370 }
 0xe05   :  { %v1276_v54 = vsel %vm259_vm15, %v2325_v20, 0.0  ;;  %v2327_v26 = vpop.eup %2326  ;;  %2332 = vrcp.f32 %v1371_v35 }
 0xe06   :  { %1277 = vadd.xlane.f32.xlu0 %v1276_v54  ;;  %v1372_v28 = vsel %vm259_vm15, %v2327_v26, 0.0  ;;  %v2329_v31 = vpop.eup %2328 }
 0xe07   :  { %v1185_v34 = vmul.f32 %v2329_v31, %v2898_v62 }
 0xe08   :  { %v2331_v37 = vpop.eup %2330 }
 0xe09   :  { %v2207_v23 = vpop.permute.xlu2 %2206  ;;  %v1186_v40 = vmul.f32 %v2331_v37, %v2319_v6  ;;  %v2127_v37 = vld [vmem:[%s3079_s9 + $0x18] sm:$0xff] }
 0xe0a   :  { %v2208_v24 = vunpack.i.l.bf16 %v2207_v23  ;;  %v2209_v27 = vunpack.i.h.bf16 %v2207_v23 }
 0xe0b   :  { %v2333_v42 = vpop.eup %2332 }
 0xe0c   :  { %1309 = vmatpush.msra.mxu3 %v2208_v24  ;;  %v1377_v43 = vmul.f32 %v2333_v42, %v2321_v25 }
 0xe0e   :  { %1310 = vmatpush.msra.mxu3 %v2209_v27  ;;  %1373 = vadd.xlane.f32.xlu0 %v1372_v28 }
 0xe10   :  { %1610 = vmatpush.bf16.msrb.mxu3 %v2127_v37  ;;  %v2129_v37 = vld [vmem:[%s3081_s11 + $0x48] sm:$0xff] }
 0xe11   :  { %v2202_v30 = vpop.permute.xlu1 %2201 }
 0xe12   :  { %v2203_v32 = vunpack.i.l.bf16 %v2202_v30  ;;  %v2204_v33 = vunpack.i.h.bf16 %v2202_v30 }
 0xe14   :  { %1213 = vmatpush.msra.mxu0 %v2203_v32 }
 0xe16   :  { %1214 = vmatpush.msra.mxu0 %v2204_v33 }
 0xe17   :  { %1998 = vmatmul.msk.f32.vlgmr.msra.gmra.mxu0 %vm259_vm15, %v1185_v34 }
 0xe19   :  { %v2212_v36 = vpop.permute.xlu1 %2211 }
 0xe1a   :  { %v2213_v38 = vunpack.i.l.bf16 %v2212_v36  ;;  %v2214_v39 = vunpack.i.h.bf16 %v2212_v36 }
 0xe1c   :  { %1405 = vmatpush.msrb.mxu0 %v2213_v38 }
 0xe1e   :  { %1406 = vmatpush.msrb.mxu0 %v2214_v39  ;;  %v2126_v39 = vld [vmem:[%s3079_s9 + $0x10] sm:$0xff] }
 0xe1f   :  { %1999 = vmatmul.msk.f32.gmra.mxu0 %vm259_vm15, %v1186_v40  ;;  %1611 = vmatpush.bf16.msrb.mxu3 %v2126_v39  ;;  %v2242_v39 = vld [vmem:[%s3080_s10 + $0x1] ss:$0 sm:$0xff] }
 0xe27   :  { %2010 = vmatmul.msk.f32.vlgmr.msrb.gmra.mxu0 %vm259_vm15, %v1377_v43 }
 0xe71   :  { %v1275_v44 = vpop.xlane.xlu0 %1274 }
 0xe72   :  { %2334 = vrcp.f32 %v1275_v44 }
 0xe78   :  { %v2335_v46 = vpop.eup %2334 }
 0xe79   :  { %v1281_v47 = vmul.f32 %v2335_v46, %v2323_v15  ;;  %v1278_v48 = vpop.xlane.xlu0 %1277 }
 0xe7a   :  { %2336 = vrcp.f32 %v1278_v48 }
 0xe7b   :  { %2004 = vmatmul.msk.f32.vlgmr.msra.gmra.mxu3 %vm259_vm15, %v1281_v47 }
 0xe80   :  { %v2337_v51 = vpop.eup %2336 }
 0xe81   :  { %v1374_v62 = vpop.xlane.xlu0 %1373  ;;  %v1282_v55 = vmul.f32 %v2337_v51, %v2325_v20 }
 0xe82   :  { %2338 = vrcp.f32 %v1374_v62 }
 0xe83   :  { %2005 = vmatmul.msk.f32.gmra.mxu3 %vm259_vm15, %v1282_v55 }
 0xe88   :  { %v2339_v53 = vpop.eup %2338 }
 0xe89   :  { %v1378_v49 = vmul.f32 %v2339_v53, %v2327_v26 }
 0xe8b   :  { %2011 = vmatmul.msk.f32.gmra.mxu0 %vm259_vm15, %v1378_v49 }
 0xe94   :  { %v1216_v50 = vpop.f32.mrf.mxu0 }
 0xe9c   :  { %v1219_v56 = vpop.f32.mrf.mxu0 }
 0xe9d   :  { %v2215_v57 = vpack.i.bf16 %v1219_v56, %v1216_v50 }
 0xe9f   :  { %2216 = vrot.lane.b32.xlu2 %v2215_v57, %s3103_s21 }
 0xea4   :  { %v1408_v59 = vpop.f32.mrf.mxu0 }
 0xef9   :  { %v2217_v1 = vpop.permute.xlu2 %2216 }
 0xefa   :  { %v2219_v5 = vunpack.i.h.bf16 %v2217_v1  ;;  %v2218_v6 = vunpack.i.l.bf16 %v2217_v1 }
 0xefc   :  { %v1439_v8 = vsel %vm227_vm14, %v2902_v52, %v2219_v5  ;;  %v1438_v29 = vsel %vm227_vm14, %v2896_v61, %v2218_v6  ;;  %v2239_v52 = vld [vmem:[%s3074_s4 + $0x1] ss:$0 sm:$0xff] }
 0xefe   :  { %v1312_v58 = vpop.f32.mrf.mxu3 }
 0xf06   :  { %v1315_v60 = vpop.f32.mrf.mxu3 }
 0xf07   :  { %v2220_v63 = vpack.i.bf16 %v1315_v60, %v1312_v58 }
 0xf08   :  { %v1411_v2 = vpop.f32.mrf.mxu0 }
 0xf09   :  { %v2225_v3 = vpack.i.bf16 %v1411_v2, %v1408_v59  ;;  %2221 = vrot.lane.b32.xlu1 %v2220_v63, %s3104_s26 }
 0xf0b   :  { %2226 = vrot.lane.b32.xlu0 %v2225_v3, %s3105_s5 }
 0xf7b   :  { %v2222_v21 = vpop.permute.xlu1 %2221 }
 0xf7c   :  { %v2224_v25 = vunpack.i.h.bf16 %v2222_v21  ;;  %v2223_v7 = vunpack.i.l.bf16 %v2222_v21 }
 0xf7d   :  { %v2227_v9 = vpop.permute.xlu0 %2226 }
 0xf7e   :  { %v1441_v11 = vsel %vm259_vm15, %v1439_v8, %v2224_v25  ;;  %v1440_v12 = vsel %vm259_vm15, %v1438_v29, %v2223_v7  ;;  %v2229_v14 = vunpack.i.h.bf16 %v2227_v9  ;;  %v2228_v15 = vunpack.i.l.bf16 %v2227_v9 }
 0xf80   :  { %v1443_v16 = vsel %vm633_vm1, %v1441_v11, %v2229_v14  ;;  %v1442_v17 = vsel %vm633_vm1, %v1440_v12, %v2228_v15 }
 0xf81   :  { %v1444_v13 = vpack.c.bf16 %v1443_v16, %v1442_v17 }
 0xf83   :  { %2024 = vmatmul.msk.bf16.vlgmr.msrb.gmra.mxu1 %vm93_vm0, %v1444_v13 }
0x1000   :  { %v1474_v19 = vpop.f32.mrf.mxu1 }
0x1001   :  { %v1479_v61 = vadd.f32 %v1474_v19, %v2797_v41 }
0x1003   :  { %v2947_v18 = vadd.f32 %v2239_v52, %v1479_v61  ;;  %v2240_v61 = vld [vmem:[#allocation5 + $0x1] ss:$0 sm:$0xff] }
0x1005   :  { %v1492_v20 = vsel %vm93_vm0, %v2947_v18, 0.0 }
0x1006   :  { %1493 = vadd.xlane.f32.xlu2 %v1492_v20 }
0x1008   :  { %v1476_v54 = vpop.f32.mrf.mxu1 }
0x1009   :  { %v1480_v22 = vadd.f32 %v1476_v54, %v2802_v45 }
0x100b   :  { %v2952_v23 = vadd.f32 %v2239_v52, %v1480_v22 }
0x100d   :  { %v1495_v24 = vsel %vm93_vm0, %v2952_v23, 0.0 }
0x100e   :  { %1496 = vadd.xlane.f32.xlu1 %v1495_v24 }
0x1079   :  { %v1494_v26 = vpop.xlane.xlu2 %1493 }
0x107a   :  { %v1498_v27 = vmul.f32 %v1494_v26, %v2569_v10 }
0x107c   :  { %v2958_v41 = vsub.f32 %v2947_v18, %v1498_v27  ;;  %v2241_v27 = vld [vmem:[%s3078_s8 + $0x1] ss:$0 sm:$0xff] }
0x107e   :  { %v1502_v28 = vmul.f32 %v2958_v41, %v2958_v41 }
0x1080   :  { %v1504_v30 = vsel %vm93_vm0, %v1502_v28, 0.0 }
0x1081   :  { %1505 = vadd.xlane.f32.xlu0 %v1504_v30  ;;  %v1497_v31 = vpop.xlane.xlu1 %1496 }
0x1082   :  { %v1499_v45 = vmul.f32 %v1497_v31, %v2569_v10 }
0x1084   :  { %v2965_v32 = vsub.f32 %v2952_v23, %v1499_v45 }
0x1086   :  { %v1503_v33 = vmul.f32 %v2965_v32, %v2965_v32 }
0x1088   :  { %v1507_v34 = vsel %vm93_vm0, %v1503_v33, 0.0  ;;  %v2133_v33 = vld [vmem:[%s3081_s11 + $0x68] sm:$0xff] }
0x1089   :  { %1508 = vadd.xlane.f32.xlu2 %v1507_v34  ;;  %v2132_v34 = vld [vmem:[%s3081_s11 + $0x60] sm:$0xff] }
0x10f4   :  { %v1506_v35 = vpop.xlane.xlu0 %1505 }
0x10f5   :  { %v1510_v36 = vmul.f32 %v1506_v35, %v2569_v10  ;;  %v2131_v35 = vld [vmem:[%s3081_s11 + $0x58] sm:$0xff] }
0x10f7   :  { %v1512_v38 = vadd.f32 1e-05, %v1510_v36  ;;  %v2130_v36 = vld [vmem:[%s3081_s11 + $0x50] sm:$0xff] }
0x10f9   :  { %2340 = vrsqrt.f32 %v1512_v38  ;;  %vm1521_vm14 = vcmp.eq.f32.partialorder %v1512_v38, inf  ;;  %v1524_v56 = vand.u32 2147483648, %v1512_v38  ;;  %vm1523_vm15 = vcmp.eq.f32.partialorder %v1512_v38, 0.0 }
0x10fc   :  { %v1509_v40 = vpop.xlane.xlu2 %1508 }
0x10fd   :  { %v1511_v42 = vmul.f32 %v1509_v40, %v2569_v10 }
0x10ff   :  { %v2341_v43 = vpop.eup %2340  ;;  %v1513_v44 = vadd.f32 1e-05, %v1511_v42 }
0x1100   :  { %v1515_v46 = vmul.f32 %v2341_v43, %v1512_v38 }
0x1101   :  { %2342 = vrsqrt.f32 %v1513_v44  ;;  %vm1533_vm1 = vcmp.eq.f32.partialorder %v1513_v44, inf  ;;  %v1536_v3 = vand.u32 2147483648, %v1513_v44  ;;  %vm1535_vm2 = vcmp.eq.f32.partialorder %v1513_v44, 0.0 }
0x1102   :  { %v1516_v47 = vmul.f32 %v2341_v43, %v1515_v46 }
0x1104   :  { %v1517_v48 = vmul.f32 0.5, %v1516_v47 }
0x1106   :  { %v1518_v51 = vsub.f32 1.5, %v1517_v48 }
0x1107   :  { %v2343_v62 = vpop.eup %2342 }
0x1108   :  { %v1519_v55 = vmul.f32 %v2341_v43, %v1518_v51  ;;  %v1527_v53 = vmul.f32 %v2343_v62, %v1513_v44 }
0x110a   :  { %v1520_v49 = vmul.f32 %v1519_v55, %v1512_v38  ;;  %v1528_v50 = vmul.f32 %v2343_v62, %v1527_v53 }
0x110c   :  { %v1522_v57 = vsel %vm1521_vm14, %v1512_v38, %v1520_v49  ;;  %v1529_v58 = vmul.f32 0.5, %v1528_v50  ;;  %v2128_v38 = vld [vmem:[%s3081_s11 + $0x40] sm:$0xff] }
0x110d   :  { %v1525_v59 = vsel %vm1523_vm15, %v1524_v56, %v1522_v57 }
0x110e   :  { %2344 = vrcp.f32 %v1525_v59  ;;  %v1530_v60 = vsub.f32 1.5, %v1529_v58  ;;  %v1549_v25 = vand.u32 2147483648, %v1525_v59  ;;  %vm1543_vm4 = vweird.f32 %v1525_v59 }
0x110f   :  { %v1547_v8 = vand.u32 2147483647, %v1525_v59 }
0x1110   :  { %v1531_v63 = vmul.f32 %v2343_v62, %v1530_v60  ;;  %v1550_v12 = vor.u32 1.1754944e-38, %v1549_v25 }
0x1111   :  { %vm1548_vm6 = vcmp.eq.f32.partialorder %v1547_v8, 8.507059e+37 }
0x1112   :  { %v1532_v2 = vmul.f32 %v1531_v63, %v1513_v44 }
0x1114   :  { %v2345_v4 = vpop.eup %2344  ;;  %v1534_v0 = vsel %vm1533_vm1, %v1513_v44, %v1532_v2 }
0x1115   :  { %v1537_v1 = vsel %vm1535_vm2, %v1536_v3, %v1534_v0  ;;  %v1539_v5 = vmul.f32 %v2345_v4, %v1525_v59  ;;  %vm1544_vm3 = vweird.f32 %v2345_v4 }
0x1116   :  { %2346 = vrcp.f32 %v1537_v1  ;;  %vm1545_vm5 = vmor %vm1543_vm4, %vm1544_vm3  ;;  %v1564_v16 = vand.u32 2147483648, %v1537_v1  ;;  %v1562_v13 = vand.u32 2147483647, %v1537_v1  ;;  %vm1558_vm8 = vweird.f32 %v1537_v1 }
0x1117   :  { %v1540_v6 = vsub.f32 1.0, %v1539_v5 }
0x1118   :  { %v1565_v20 = vor.u32 1.1754944e-38, %v1564_v16  ;;  %vm1563_vm10 = vcmp.eq.f32.partialorder %v1562_v13, 8.507059e+37 }
0x1119   :  { %v1541_v21 = vmul.f32 %v2345_v4, %v1540_v6 }
0x111b   :  { %v1542_v7 = vadd.f32 %v2345_v4, %v1541_v21 }
0x111c   :  { %v2347_v29 = vpop.eup %2346 }
0x111d   :  { %v1546_v9 = vsel %vm1545_vm5, %v2345_v4, %v1542_v7  ;;  %v1554_v11 = vmul.f32 %v2347_v29, %v1537_v1  ;;  %vm1559_vm7 = vweird.f32 %v2347_v29  ;;  %v2243_v1 = vld [vmem:[%s3082_s12 + $0x1] ss:$0 sm:$0xff] }
0x111e   :  { %v1551_v15 = vsel %vm1548_vm6, %v1550_v12, %v1546_v9  ;;  %vm1560_vm9 = vmor %vm1558_vm8, %vm1559_vm7 }
0x111f   :  { %v1555_v14 = vsub.f32 1.0, %v1554_v11  ;;  %v1552_v52 = vmul.f32 %v1551_v15, %v2958_v41  ;;  %v2135_v41 = vld [vmem:[%s3081_s11 + $0x78] sm:$0xff] }
0x1120   :  { %1707 = vmatpush.bf16.msrb.mxu2 %v2135_v41  ;;  %v2094_v41 = vld [vmem:[%s3085_s15 + $0x8] sm:$0xf0] }
0x1121   :  { %v1556_v17 = vmul.f32 %v2347_v29, %v1555_v14  ;;  %v1571_v26 = vmul.f32 %v2240_v61, %v1552_v52 }
0x1123   :  { %v1557_v19 = vadd.f32 %v2347_v29, %v1556_v17  ;;  %v1576_v30 = vadd.f32 %v2241_v27, %v1571_v26 }
0x1125   :  { %v1561_v54 = vsel %vm1560_vm9, %v2347_v29, %v1557_v19 }
0x1126   :  { %v1566_v22 = vsel %vm1563_vm10, %v1565_v20, %v1561_v54  ;;  %v2100_v20 = vld [vmem:[%s3085_s15 + $0x10] sm:$0xf]  ;;  %v2139_v54 = vld [vmem:[%s3085_s15 + $0x14] sm:$0xf0] }
0x1127   :  { %v1567_v24 = vmul.f32 %v1566_v22, %v2965_v32  ;;  %v2134_v32 = vld [vmem:[%s3081_s11 + $0x70] sm:$0xff]  ;;  %v2101_v26 = vor.u32 %v2139_v54, %v2100_v20 }
0x1128   :  { %1708 = vmatpush.bf16.msrb.mxu2 %v2134_v32  ;;  %v2138_v22 = vld [vmem:[%s3085_s15 + $0x14] sm:$0xf] }
0x1129   :  { %v1572_v28 = vmul.f32 %v2240_v61, %v1567_v24  ;;  %1845 = vmatpush.bf16.msra.mxu0 %v2101_v26 }
0x112b   :  { %v1577_v31 = vadd.f32 %v2241_v27, %v1572_v28  ;;  %v2102_v27 = vld [vmem:[%s3085_s15 + $0x18] sm:$0xf0]  ;;  %v2092_v28 = vld [vmem:[%s3085_s15] sm:$0xf] }
0x112c   :  { %1709 = vmatpush.bf16.msrb.mxu2 %v2133_v33 }
0x112d   :  { %v1578_v45 = vpack.c.bf16 %v1577_v31, %v1576_v30  ;;  %v2105_v30 = vor.u32 %v2138_v22, %v2102_v27  ;;  %v2137_v31 = vld [vmem:[%s3085_s15 + $0x4] sm:$0xf0] }
0x112e   :  { %v2093_v32 = vor.u32 %v2137_v31, %v2092_v28 }
0x112f   :  { %2040 = vmatmul.msk.bf16.vlgmr.msrb.gmra.mxu3 %vm93_vm0, %v1578_v45  ;;  %v2136_v45 = vld [vmem:[%s3085_s15 + $0x4] sm:$0xf]  ;;  %1859 = vmatpush.bf16.msra.mxu1 %v2105_v30 }
0x1130   :  { %1710 = vmatpush.bf16.msrb.mxu2 %v2132_v34  ;;  %v2097_v33 = vor.u32 %v2136_v45, %v2094_v41  ;;  %1846 = vmatpush.bf16.msra.mxu0 %v2093_v32 }
0x1133   :  { %1860 = vmatpush.bf16.msra.mxu1 %v2097_v33 }
0x1134   :  { %1711 = vmatpush.bf16.msrb.mxu2 %v2131_v35 }
0x1138   :  { %1712 = vmatpush.bf16.msrb.mxu2 %v2130_v36 }
0x113c   :  { %1713 = vmatpush.bf16.msrb.mxu2 %v2129_v37 }
0x1140   :  { %1714 = vmatpush.bf16.msrb.mxu2 %v2128_v38 }
0x11b2   :  { %v1613_v40 = vpop.f32.mrf.mxu3 }
0x11b3   :  { %v1614_v42 = vadd.f32 %v2242_v39, %v1613_v40 }
0x11b5   :  { %v1620_v43 = vmul.f32 %v1614_v42, %v1614_v42  ;;  %v1618_v60 = vmul.f32 0.5, %v1614_v42 }
0x11b7   :  { %v1622_v44 = vmul.f32 %v1620_v43, %v1614_v42 }
0x11b9   :  { %v1624_v46 = vmul.f32 0.044715, %v1622_v44 }
0x11ba   :  { %v1615_v47 = vpop.f32.mrf.mxu3 }
0x11bb   :  { %v1626_v48 = vadd.f32 %v1624_v46, %v1614_v42  ;;  %v1616_v51 = vadd.f32 %v2242_v39, %v1615_v47 }
0x11bd   :  { %v1621_v62 = vmul.f32 %v1616_v51, %v1616_v51  ;;  %v1628_v55 = vmul.f32 0.7978846, %v1626_v48  ;;  %v1619_v63 = vmul.f32 0.5, %v1616_v51 }
0x11bf   :  { %v1623_v53 = vmul.f32 %v1621_v62, %v1616_v51  ;;  %2348 = vtanh.f32 %v1628_v55 }
0x11c1   :  { %v1625_v49 = vmul.f32 0.044715, %v1623_v53 }
0x11c3   :  { %v1627_v50 = vadd.f32 %v1625_v49, %v1616_v51 }
0x11c5   :  { %v1629_v56 = vmul.f32 0.7978846, %v1627_v50  ;;  %v2349_v57 = vpop.eup %2348 }
0x11c6   :  { %v1632_v58 = vadd.f32 1.0, %v2349_v57 }
0x11c7   :  { %2350 = vtanh.f32 %v1629_v56 }
0x11c8   :  { %v1634_v3 = vmul.f32 %v1632_v58, %v1618_v60 }
0x11cd   :  { %v2351_v59 = vpop.eup %2350 }
0x11ce   :  { %v1633_v2 = vadd.f32 1.0, %v2351_v59 }
0x11d0   :  { %v1635_v4 = vmul.f32 %v1633_v2, %v1619_v63 }
0x11d2   :  { %v1636_v0 = vpack.c.bf16 %v1635_v4, %v1634_v3 }
0x11d4   :  { %1715 = vmatmul.bf16.vlgmr.msrb.gmra.mxu2 %v1636_v0 }
0x1257   :  { %v1716_v5 = vpop.f32.mrf.mxu2 }
0x1258   :  { %v1717_v6 = vadd.f32 %v2243_v1, %v1716_v5 }
0x125a   :  { %v1721_v21 = vadd.f32 %v1717_v6, %v2947_v18 }
0x125c   :  { %v1725_v25 = vsel %vm93_vm0, %v1721_v21, 0.0 }
0x125d   :  { %1726 = vadd.xlane.f32.xlu1 %v1725_v25 }
0x125f   :  { %v1718_v7 = vpop.f32.mrf.mxu2 }
0x1260   :  { %v1719_v8 = vadd.f32 %v2243_v1, %v1718_v7 }
0x1262   :  { %v1722_v29 = vadd.f32 %v1719_v8, %v2952_v23 }
0x1264   :  { %v1728_v9 = vsel %vm93_vm0, %v1722_v29, 0.0 }
0x1265   :  { %1729 = vadd.xlane.f32.xlu2 %v1728_v9 }
0x12d0   :  { %v1727_v11 = vpop.xlane.xlu1 %1726 }
0x12d1   :  { %v1731_v12 = vmul.f32 %v1727_v11, %v2569_v10 }
0x12d3   :  { %v3019_v14 = vsub.f32 %v1721_v21, %v1731_v12 }
0x12d5   :  { %v1735_v15 = vmul.f32 %v3019_v14, %v3019_v14 }
0x12d7   :  { %v1737_v18 = vsel %vm93_vm0, %v1735_v15, 0.0  ;;  %v2244_v15 = vld [vmem:[%s3083_s13] ss:$0 sm:$0xff]  ;;  %s2458_s13 = smov [#allocation7]  }
0x12d8   :  { %v1730_v16 = vpop.xlane.xlu2 %1729  ;;  %1738 = vadd.xlane.f32.xlu1 %v1737_v18  ;;  %s1875_s23 = sshll.u32 %s2458_s13, 4  ;;  %s1876_s23 = int_to_ptr.vmem [resolvable:$true] %s1875_s23 }
0x12d9   :  { %v1732_v17 = vmul.f32 %v1730_v16, %v2569_v10 }
0x12db   :  { %v3025_v13 = vsub.f32 %v1722_v29, %v1732_v17 }
0x12dd   :  { %v1736_v23 = vmul.f32 %v3025_v13, %v3025_v13 }
0x12df   :  { %v1740_v52 = vsel %vm93_vm0, %v1736_v23, 0.0 }
0x12e0   :  { %1741 = vadd.xlane.f32.xlu2 %v1740_v52 }
0x134b   :  { %v1739_v19 = vpop.xlane.xlu1 %1738 }
0x134c   :  { %v1743_v61 = vmul.f32 %v1739_v19, %v2569_v10  ;;  %v2245_v19 = vld [vmem:[%s3084_s14] ss:$0 sm:$0xff]  ;;  %s2459_s14 = smov 256  }
0x134e   :  { %v1745_v24 = vadd.f32 1e-05, %v1743_v61 }
0x1350   :  { %2352 = vrsqrt.f32 %v1745_v24  ;;  %vm1754_vm11 = vcmp.eq.f32.partialorder %v1745_v24, inf  ;;  %v1757_v51 = vand.u32 2147483648, %v1745_v24  ;;  %vm1756_vm12 = vcmp.eq.f32.partialorder %v1745_v24, 0.0 }
0x1353   :  { %v1742_v34 = vpop.xlane.xlu2 %1741 }
0x1354   :  { %v1744_v35 = vmul.f32 %v1742_v34, %v2569_v10 }
0x1356   :  { %v2353_v36 = vpop.eup %2352  ;;  %v1746_v37 = vadd.f32 1e-05, %v1744_v35 }
0x1357   :  { %v1748_v38 = vmul.f32 %v2353_v36, %v1745_v24 }
0x1358   :  { %2354 = vrsqrt.f32 %v1746_v37  ;;  %vm1766_vm13 = vcmp.eq.f32.partialorder %v1746_v37, inf  ;;  %v1769_v56 = vand.u32 2147483648, %v1746_v37  ;;  %vm1768_vm14 = vcmp.eq.f32.partialorder %v1746_v37, 0.0 }
0x1359   :  { %v1749_v39 = vmul.f32 %v2353_v36, %v1748_v38 }
0x135b   :  { %v1750_v40 = vmul.f32 0.5, %v1749_v39 }
0x135d   :  { %v1751_v42 = vsub.f32 1.5, %v1750_v40 }
0x135e   :  { %v2355_v43 = vpop.eup %2354 }
0x135f   :  { %v1752_v44 = vmul.f32 %v2353_v36, %v1751_v42  ;;  %v1760_v46 = vmul.f32 %v2355_v43, %v1746_v37 }
0x1361   :  { %v1753_v47 = vmul.f32 %v1752_v44, %v1745_v24  ;;  %v1761_v48 = vmul.f32 %v2355_v43, %v1760_v46 }
0x1363   :  { %v1755_v62 = vsel %vm1754_vm11, %v1745_v24, %v1753_v47  ;;  %v1762_v55 = vmul.f32 0.5, %v1761_v48 }
0x1364   :  { %v1758_v10 = vsel %vm1756_vm12, %v1757_v51, %v1755_v62 }
0x1365   :  { %2356 = vrcp.f32 %v1758_v10  ;;  %v1763_v53 = vsub.f32 1.5, %v1762_v55  ;;  %v1782_v3 = vand.u32 2147483648, %v1758_v10  ;;  %vm1776_vm1 = vweird.f32 %v1758_v10 }
0x1366   :  { %v1780_v0 = vand.u32 2147483647, %v1758_v10 }
0x1367   :  { %v1764_v49 = vmul.f32 %v2355_v43, %v1763_v53  ;;  %v1783_v21 = vor.u32 1.1754944e-38, %v1782_v3 }
0x1368   :  { %vm1781_vm3 = vcmp.eq.f32.partialorder %v1780_v0, 8.507059e+37 }
0x1369   :  { %v1765_v50 = vmul.f32 %v1764_v49, %v1746_v37 }
0x136b   :  { %v2357_v57 = vpop.eup %2356  ;;  %v1767_v58 = vsel %vm1766_vm13, %v1746_v37, %v1765_v50 }
0x136c   :  { %v1770_v59 = vsel %vm1768_vm14, %v1769_v56, %v1767_v58  ;;  %v1772_v60 = vmul.f32 %v2357_v57, %v1758_v10  ;;  %vm1777_vm15 = vweird.f32 %v2357_v57 }
0x136d   :  { %2358 = vrcp.f32 %v1770_v59  ;;  %vm1778_vm2 = vmor %vm1776_vm1, %vm1777_vm15  ;;  %v1797_v8 = vand.u32 2147483648, %v1770_v59  ;;  %v1795_v9 = vand.u32 2147483647, %v1770_v59  ;;  %vm1791_vm5 = vweird.f32 %v1770_v59 }
0x136e   :  { %v1773_v63 = vsub.f32 1.0, %v1772_v60 }
0x136f   :  { %v1798_v18 = vor.u32 1.1754944e-38, %v1797_v8  ;;  %vm1796_vm7 = vcmp.eq.f32.partialorder %v1795_v9, 8.507059e+37 }
0x1370   :  { %v1774_v2 = vmul.f32 %v2357_v57, %v1773_v63 }
0x1372   :  { %v1775_v4 = vadd.f32 %v2357_v57, %v1774_v2 }
0x1373   :  { %v2359_v1 = vpop.eup %2358 }
0x1374   :  { %v1779_v5 = vsel %vm1778_vm2, %v2357_v57, %v1775_v4  ;;  %v1787_v6 = vmul.f32 %v2359_v1, %v1770_v59  ;;  %vm1792_vm4 = vweird.f32 %v2359_v1 }
0x1375   :  { %v1784_v7 = vsel %vm1781_vm3, %v1783_v21, %v1779_v5  ;;  %vm1793_vm6 = vmor %vm1791_vm5, %vm1792_vm4 }
0x1376   :  { %v1788_v25 = vsub.f32 1.0, %v1787_v6  ;;  %v1785_v11 = vmul.f32 %v1784_v7, %v3019_v14 }
0x1378   :  { %v1789_v29 = vmul.f32 %v2359_v1, %v1788_v25  ;;  %v1804_v52 = vmul.f32 %v2244_v15, %v1785_v11 }
0x137a   :  { %v1790_v12 = vadd.f32 %v2359_v1, %v1789_v29  ;;  %v1809_v14 = vadd.f32 %v2245_v19, %v1804_v52 }
0x137c   :  { %v1794_v16 = vsel %vm1793_vm6, %v2359_v1, %v1790_v12 }
0x137d   :  { %v1799_v17 = vsel %vm1796_vm7, %v1798_v18, %v1794_v16 }
0x137e   :  { %v1800_v23 = vmul.f32 %v1799_v17, %v3025_v13 }
0x1380   :  { %v1805_v61 = vmul.f32 %v2244_v15, %v1800_v23 }
0x1382   :  { %v1810_v20 = vadd.f32 %v2245_v19, %v1805_v61 }
0x1384   :  { %v1811_v54 = vpack.c.bf16 %v1810_v20, %v1809_v14 }
0x1386   :  { %2106 = vmatmul.msk.bf16.vlgmr.msra.gmra.mxu0 %vm93_vm0, %v1811_v54  ;;  %2107 = vmatmul.msk.bf16.vlgmr.msra.gmra.mxu1 %vm93_vm0, %v1811_v54 }
0x1403   :  { %v1848_v22 = vpop.f32.mrf.mxu0  ;;  %v1862_v24 = vpop.f32.mrf.mxu1 }
0x1404   :  { %1867 = vst [vmem:[#allocation7] sm:$0xff] %v1848_v22 }
0x1405   :  { %1868 = vst [vmem:[#allocation7 + $0x8] sm:$0xff] %v1862_v24 }
0x140b   :  { %v1850_v13 = vpop.f32.mrf.mxu0  ;;  %v1864_v26 = vpop.f32.mrf.mxu1 }
0x140c   :  { %1869 = vst [vmem:[#allocation7 + $0x10] sm:$0xff] %v1850_v13 }
0x140d   :  { %1870 = vst [vmem:[#allocation7 + $0x18] sm:$0xff] %v1864_v26 }
0x140e   :  { %1883 = dma.vmem_to_hbm [thread:$0]  %s1876_s23, 512, %s1878_s17, [#allocation4], %s2459_s14, %s2459_s14, %s3104_s26  }
0x140f   :  { %2438 = dma.done.wait [#allocation4], 512  }
0x1410   :  { %2439 = vsyncadd [#allocation4], 4294966784 }
0x1411   :  { %1888 = vsyncpa [#allocation3], 1 }
0x1412   :  { %1889 = vsyncpa [#allocation6], 1 }
0x1413   :  { %1890 = vsyncpa [#allocation4], 1 }

</bundles_post_ra>
